<compile_context>
chip_gen: v6e
topology: v6e:2x2x1
jax: 0.10.0
libtpu: 0.0.40
codegen_flags: <defaults>
</compile_context>

<pallas_src>
import jax
import jax.numpy as jnp
from jax.experimental import pallas as pl
from jax.experimental.pallas import tpu as pltpu


def _cost_to_go_kernel(x_ref, w1_ref, w2_ref, wstack_ref, b1_ref, cvec_ref,
                       out_ref):
    f32 = jnp.float32
    bf16 = jnp.bfloat16

    H1 = w1_ref.shape[1]          # padded hidden_size_1
    H2 = w2_ref.shape[1]          # padded hidden_size_2
    bt = x_ref.shape[0]           # batch tile

    def crow(i):
        # Lazy (1, H2) f32 const row, read at its point of use so it does not
        # pin vregs across the whole matmul chain.
        return cvec_ref[i:i + 1, :]

    x = x_ref[...]                # (bt, in_p) bf16

    # ---- initial_layers, K-blocked over the wide hidden dim ---------------
    # relu(x @ W1 + b1) @ W2 computed chunk-by-chunk; the (bt, H1) f32
    # intermediate is never materialized.
    KC = 256 if H1 % 256 == 0 else 128
    acc = jnp.zeros((bt, H2), f32)
    for c in range(H1 // KC):     # static, fully unrolled (H1 is compile-time)
        lo, hi = c * KC, (c + 1) * KC
        hc = jnp.dot(x, w1_ref[:, lo:hi], preferred_element_type=f32)
        hc = jnp.maximum(hc + b1_ref[:, lo:hi], 0.0).astype(bf16)
        acc = acc + jnp.dot(hc, w2_ref[lo:hi, :], preferred_element_type=f32)
    h = jnp.maximum(acc + crow(0), 0.0)            # after the second ReLU

    # ---- projection (no activation) ----------------------------------------
    h = jnp.dot(h.astype(bf16), wstack_ref[0], preferred_element_type=f32) + crow(1)

    # ---- residual block 1: relu(h + Linear(relu(Linear(h)))) ---------------
    t = jnp.maximum(
        jnp.dot(h.astype(bf16), wstack_ref[1], preferred_element_type=f32) + crow(2),
        0.0)
    t = jnp.dot(t.astype(bf16), wstack_ref[2], preferred_element_type=f32) + crow(3)
    h = jnp.maximum(h + t, 0.0)

    # ---- residual block 2 ---------------------------------------------------
    t = jnp.maximum(
        jnp.dot(h.astype(bf16), wstack_ref[3], preferred_element_type=f32) + crow(4),
        0.0)
    t = jnp.dot(t.astype(bf16), wstack_ref[4], preferred_element_type=f32) + crow(5)
    h = jnp.maximum(h + t, 0.0)

    # ---- output layer: per-row scalar = sum(h * w_out) + b_out -------------
    # b_out is spread as b_out/H2 across all H2 lanes (crow(7)), so the lane
    # reduce adds back exactly b_out.  Result is transposed to a lane-dense
    # (1, 1, bt) row so the HBM writeback is one contiguous DMA.
    r = jnp.sum(h * crow(6) + crow(7), axis=-1, keepdims=True)   # (bt, 1) f32
    out_ref[...] = jnp.transpose(r).reshape(1, 1, bt)


def _round_up(n, m):
    return pl.cdiv(n, m) * m


def _pad2(a, rows, cols):
    out = jnp.zeros((rows, cols), a.dtype)
    return out.at[:a.shape[0], :a.shape[1]].set(a)


def _init_linear(key, fan_in, fan_out):
    """PyTorch nn.Linear default init: U(-1/sqrt(fan_in), 1/sqrt(fan_in))."""
    kw, kb = jax.random.split(key)
    bound = 1.0 / jnp.sqrt(jnp.float32(fan_in))
    w = jax.random.uniform(kw, (fan_in, fan_out), jnp.float32, -bound, bound)
    b = jax.random.uniform(kb, (fan_out,), jnp.float32, -bound, bound)
    return w, b


def make_params(key, input_size=48, hidden_size_1=1000, hidden_size_2=100):
    keys = jax.random.split(key, 8)
    params = {}
    params["l1"] = _init_linear(keys[0], input_size, hidden_size_1)
    params["l2"] = _init_linear(keys[1], hidden_size_1, hidden_size_2)
    params["proj"] = _init_linear(keys[2], hidden_size_2, hidden_size_2)
    params["r1a"] = _init_linear(keys[3], hidden_size_2, hidden_size_2)
    params["r1b"] = _init_linear(keys[4], hidden_size_2, hidden_size_2)
    params["r2a"] = _init_linear(keys[5], hidden_size_2, hidden_size_2)
    params["r2b"] = _init_linear(keys[6], hidden_size_2, hidden_size_2)
    params["out"] = _init_linear(keys[7], hidden_size_2, 1)
    return params


def cost_to_go_net(x, params, *, batch_tile=None):
    n, in_dim = x.shape
    h1 = params["l1"][0].shape[1]
    h2 = params["l2"][0].shape[1]

    # padded (lane-aligned) feature dims
    in_p = _round_up(in_dim, 128)
    h1_p = _round_up(h1, 128)
    h2_p = _round_up(h2, 128)

    # Batch tile: tiny batches get one tile; larger batches get >= 2 tiles
    # (both v7x TensorCores busy), each <= 512 rows, sized to minimize
    # remainder padding.  Rounded to 16 rows (bf16 packed tile is (16, 128)).
    MAX_TILE = 512
    if batch_tile is None:
        if n <= 256:
            batch_tile = _round_up(max(n, 1), 16)
        else:
            n_tiles = max(2, pl.cdiv(n, MAX_TILE))
            batch_tile = _round_up(pl.cdiv(n, n_tiles), 16)
    batch_tile = max(16, _round_up(batch_tile, 16))
    n_p = _round_up(n, batch_tile)
    nb = n_p // batch_tile

    # --- host-side packing ---------------------------------------------------
    x_p = (jnp.zeros((n_p, in_p), jnp.bfloat16)
           .at[:n, :in_dim].set(x.astype(jnp.bfloat16)))

    def pad_w_bf16(name, rp, cp):
        w, _ = params[name]
        return _pad2(w.astype(jnp.bfloat16), rp, cp)

    w1 = pad_w_bf16("l1", in_p, h1_p)
    w2 = pad_w_bf16("l2", h1_p, h2_p)
    wstack = jnp.stack([pad_w_bf16(nm, h2_p, h2_p)
                        for nm in ("proj", "r1a", "r1b", "r2a", "r2b")])

    def pad_row(v, cp):
        return jnp.zeros((cp,), jnp.float32).at[:v.shape[0]].set(
            v.astype(jnp.float32))

    b1 = pad_row(params["l1"][1], h1_p)[None, :]           # (1, h1_p)

    wo_col = params["out"][0][:, 0]                        # (h2,)
    bo_scalar = params["out"][1][0]                        # ()
    # Rows: b2, b_proj, b_r1a, b_r1b, b_r2a, b_r2b, w_out column, b_out/h2_p.
    # The host divisor (h2_p) and the kernel's reduce width (cvec last dim)
    # are the same padded value by construction, so the reduce adds exactly bo.
    cvec = jnp.stack([
        pad_row(params["l2"][1], h2_p),
        pad_row(params["proj"][1], h2_p),
        pad_row(params["r1a"][1], h2_p),
        pad_row(params["r1b"][1], h2_p),
        pad_row(params["r2a"][1], h2_p),
        pad_row(params["r2b"][1], h2_p),
        pad_row(wo_col, h2_p),
        jnp.full((h2_p,), bo_scalar / h2_p, jnp.float32),
    ])                                                      # (8, h2_p)

    # --- cost estimate -------------------------------------------------------
    flops = 2 * n_p * (in_p * h1_p + h1_p * h2_p + 5 * h2_p * h2_p + h2_p)
    bytes_accessed = (x_p.size * 2 + w1.size * 2 + w2.size * 2 + wstack.size * 2
                      + b1.size * 4 + cvec.size * 4 + n_p * 4)
    cost = pl.CostEstimate(flops=int(flops), transcendentals=0,
                           bytes_accessed=int(bytes_accessed))

    out = pl.pallas_call(
        _cost_to_go_kernel,
        out_shape=jax.ShapeDtypeStruct((nb, 1, batch_tile), jnp.float32),
        grid_spec=pltpu.PrefetchScalarGridSpec(
            num_scalar_prefetch=0,
            grid=(nb,),
            in_specs=[
                pl.BlockSpec((batch_tile, in_p), lambda i: (i, 0)),
                pl.BlockSpec((in_p, h1_p), lambda i: (0, 0)),
                pl.BlockSpec((h1_p, h2_p), lambda i: (0, 0)),
                pl.BlockSpec((5, h2_p, h2_p), lambda i: (0, 0, 0)),
                pl.BlockSpec((1, h1_p), lambda i: (0, 0)),
                pl.BlockSpec((8, h2_p), lambda i: (0, 0)),
            ],
            out_specs=pl.BlockSpec((1, 1, batch_tile), lambda i: (i, 0, 0)),
        ),
        compiler_params=pltpu.CompilerParams(
            dimension_semantics=("parallel",),
            vmem_limit_bytes=8 * 1024 * 1024),
        cost_estimate=cost,
    )(x_p, w1, w2, wstack, b1, cvec)

    # lane-dense (nb, 1, batch_tile) -> real rows only, shaped (n, 1)
    return out.reshape(-1)[:n].reshape(n, 1)


def cost_to_go_net_ref(x, params):
    """Pure-JAX f32 reference mirroring the PyTorch forward."""
    def lin(name, h):
        w, b = params[name]
        return h @ w + b

    h = jax.nn.relu(lin("l1", x))
    h = jax.nn.relu(lin("l2", h))
    h = lin("proj", h)
    h = jax.nn.relu(h + lin("r1b", jax.nn.relu(lin("r1a", h))))
    h = jax.nn.relu(h + lin("r2b", jax.nn.relu(lin("r2a", h))))
    return lin("out", h)


if __name__ == "__main__":
    key = jax.random.PRNGKey(0)
    k_param, k_x = jax.random.split(key)

    input_size, hidden_size_1, hidden_size_2 = 48, 1000, 100
    batch = 16

    params = make_params(k_param, input_size, hidden_size_1, hidden_size_2)
    x = jax.random.normal(k_x, (batch, input_size), jnp.float32)

    y = cost_to_go_net(x, params)
    y = jax.block_until_ready(y)

    y_ref = cost_to_go_net_ref(x, params)
    assert y.shape == (batch, 1), y.shape
    # bf16 matmuls (f32 accumulation) vs f32 reference -> relaxed tolerance.
    assert jnp.allclose(y, y_ref, atol=3e-2, rtol=3e-2), (
        "kernel output mismatch vs reference")

    print("KERNEL_OK")
</pallas_src>

<mosaic_0001>
module attributes {stable_mosaic.version = 11 : i64} {
  func.func @_cost_to_go_kernel(%arg0: i32, %arg1: memref<16x128xbf16, #tpu.memory_space<vmem>>, %arg2: memref<128x1024xbf16, #tpu.memory_space<vmem>>, %arg3: memref<1024x128xbf16, #tpu.memory_space<vmem>>, %arg4: memref<5x128x128xbf16, #tpu.memory_space<vmem>>, %arg5: memref<1x1024xf32, #tpu.memory_space<vmem>>, %arg6: memref<8x128xf32, #tpu.memory_space<vmem>>, %arg7: memref<1x1x16xf32, #tpu.memory_space<vmem>>) attributes {dimension_semantics = [#tpu.dimension_semantics<parallel>], iteration_bounds = array<i64: 1>, scalar_prefetch = 0 : i64, scratch_operands = 0 : i64, tpu.core_type = #tpu.core_type<tc>, window_params = [{transform_indices = @transform_0, window_bounds = array<i64: 16, 128>}, {pipeline_mode = #tpu.pipeline_mode<synchronous>, transform_indices = @transform_1, window_bounds = array<i64: 128, 1024>}, {pipeline_mode = #tpu.pipeline_mode<synchronous>, transform_indices = @transform_2, window_bounds = array<i64: 1024, 128>}, {pipeline_mode = #tpu.pipeline_mode<synchronous>, transform_indices = @transform_3, window_bounds = array<i64: 5, 128, 128>}, {pipeline_mode = #tpu.pipeline_mode<synchronous>, transform_indices = @transform_4, window_bounds = array<i64: 1, 1024>}, {pipeline_mode = #tpu.pipeline_mode<synchronous>, transform_indices = @transform_5, window_bounds = array<i64: 8, 128>}, {transform_indices = @transform_6, window_bounds = array<i64: 1, 1, 16>}]} {
    %c0 = arith.constant 0 : index
    %c0_0 = arith.constant 0 : index
    %0 = vector.load %arg1[%c0, %c0_0] : memref<16x128xbf16, #tpu.memory_space<vmem>>, vector<16x128xbf16>
    %cst = arith.constant 0.000000e+00 : f32
    %1 = vector.broadcast %cst : f32 to vector<16x128xf32>
    %c0_1 = arith.constant 0 : index
    %c0_2 = arith.constant 0 : index
    %2 = vector.load %arg2[%c0_1, %c0_2] : memref<128x1024xbf16, #tpu.memory_space<vmem>>, vector<128x256xbf16>
    %cst_3 = arith.constant dense<0.000000e+00> : vector<16x256xf32>
    %3 = tpu.matmul %0, %2, %cst_3 {dimension_numbers = #tpu.dot_dimension_numbers<[1], [0], [0], [1], [0, 0, 1, 1], [], []>} : vector<16x128xbf16>, vector<128x256xbf16>, vector<16x256xf32> -> vector<16x256xf32>
    %c0_4 = arith.constant 0 : index
    %c0_5 = arith.constant 0 : index
    %4 = vector.load %arg5[%c0_4, %c0_5] : memref<1x1024xf32, #tpu.memory_space<vmem>>, vector<1x256xf32>
    %5 = vector.broadcast %4 : vector<1x256xf32> to vector<16x256xf32>
    %6 = arith.addf %3, %5 : vector<16x256xf32>
    %cst_6 = arith.constant 0.000000e+00 : f32
    %7 = vector.broadcast %cst_6 : f32 to vector<16x256xf32>
    %8 = arith.maximumf %6, %7 : vector<16x256xf32>
    %9 = arith.truncf %8 : vector<16x256xf32> to vector<16x256xbf16>
    %c0_7 = arith.constant 0 : index
    %c0_8 = arith.constant 0 : index
    %10 = vector.load %arg3[%c0_7, %c0_8] : memref<1024x128xbf16, #tpu.memory_space<vmem>>, vector<256x128xbf16>
    %cst_9 = arith.constant dense<0.000000e+00> : vector<16x128xf32>
    %11 = tpu.matmul %9, %10, %cst_9 {dimension_numbers = #tpu.dot_dimension_numbers<[1], [0], [0], [1], [0, 0, 1, 1], [], []>} : vector<16x256xbf16>, vector<256x128xbf16>, vector<16x128xf32> -> vector<16x128xf32>
    %12 = arith.addf %1, %11 : vector<16x128xf32>
    %c0_10 = arith.constant 0 : index
    %c256 = arith.constant 256 : index
    %13 = vector.load %arg2[%c0_10, %c256] : memref<128x1024xbf16, #tpu.memory_space<vmem>>, vector<128x256xbf16>
    %cst_11 = arith.constant dense<0.000000e+00> : vector<16x256xf32>
    %14 = tpu.matmul %0, %13, %cst_11 {dimension_numbers = #tpu.dot_dimension_numbers<[1], [0], [0], [1], [0, 0, 1, 1], [], []>} : vector<16x128xbf16>, vector<128x256xbf16>, vector<16x256xf32> -> vector<16x256xf32>
    %c0_12 = arith.constant 0 : index
    %c256_13 = arith.constant 256 : index
    %15 = vector.load %arg5[%c0_12, %c256_13] : memref<1x1024xf32, #tpu.memory_space<vmem>>, vector<1x256xf32>
    %16 = vector.broadcast %15 : vector<1x256xf32> to vector<16x256xf32>
    %17 = arith.addf %14, %16 : vector<16x256xf32>
    %cst_14 = arith.constant 0.000000e+00 : f32
    %18 = vector.broadcast %cst_14 : f32 to vector<16x256xf32>
    %19 = arith.maximumf %17, %18 : vector<16x256xf32>
    %20 = arith.truncf %19 : vector<16x256xf32> to vector<16x256xbf16>
    %c256_15 = arith.constant 256 : index
    %c0_16 = arith.constant 0 : index
    %21 = vector.load %arg3[%c256_15, %c0_16] : memref<1024x128xbf16, #tpu.memory_space<vmem>>, vector<256x128xbf16>
    %cst_17 = arith.constant dense<0.000000e+00> : vector<16x128xf32>
    %22 = tpu.matmul %20, %21, %cst_17 {dimension_numbers = #tpu.dot_dimension_numbers<[1], [0], [0], [1], [0, 0, 1, 1], [], []>} : vector<16x256xbf16>, vector<256x128xbf16>, vector<16x128xf32> -> vector<16x128xf32>
    %23 = arith.addf %12, %22 : vector<16x128xf32>
    %c0_18 = arith.constant 0 : index
    %c512 = arith.constant 512 : index
    %24 = vector.load %arg2[%c0_18, %c512] : memref<128x1024xbf16, #tpu.memory_space<vmem>>, vector<128x256xbf16>
    %cst_19 = arith.constant dense<0.000000e+00> : vector<16x256xf32>
    %25 = tpu.matmul %0, %24, %cst_19 {dimension_numbers = #tpu.dot_dimension_numbers<[1], [0], [0], [1], [0, 0, 1, 1], [], []>} : vector<16x128xbf16>, vector<128x256xbf16>, vector<16x256xf32> -> vector<16x256xf32>
    %c0_20 = arith.constant 0 : index
    %c512_21 = arith.constant 512 : index
    %26 = vector.load %arg5[%c0_20, %c512_21] : memref<1x1024xf32, #tpu.memory_space<vmem>>, vector<1x256xf32>
    %27 = vector.broadcast %26 : vector<1x256xf32> to vector<16x256xf32>
    %28 = arith.addf %25, %27 : vector<16x256xf32>
    %cst_22 = arith.constant 0.000000e+00 : f32
    %29 = vector.broadcast %cst_22 : f32 to vector<16x256xf32>
    %30 = arith.maximumf %28, %29 : vector<16x256xf32>
    %31 = arith.truncf %30 : vector<16x256xf32> to vector<16x256xbf16>
    %c512_23 = arith.constant 512 : index
    %c0_24 = arith.constant 0 : index
    %32 = vector.load %arg3[%c512_23, %c0_24] : memref<1024x128xbf16, #tpu.memory_space<vmem>>, vector<256x128xbf16>
    %cst_25 = arith.constant dense<0.000000e+00> : vector<16x128xf32>
    %33 = tpu.matmul %31, %32, %cst_25 {dimension_numbers = #tpu.dot_dimension_numbers<[1], [0], [0], [1], [0, 0, 1, 1], [], []>} : vector<16x256xbf16>, vector<256x128xbf16>, vector<16x128xf32> -> vector<16x128xf32>
    %34 = arith.addf %23, %33 : vector<16x128xf32>
    %c0_26 = arith.constant 0 : index
    %c768 = arith.constant 768 : index
    %35 = vector.load %arg2[%c0_26, %c768] : memref<128x1024xbf16, #tpu.memory_space<vmem>>, vector<128x256xbf16>
    %cst_27 = arith.constant dense<0.000000e+00> : vector<16x256xf32>
    %36 = tpu.matmul %0, %35, %cst_27 {dimension_numbers = #tpu.dot_dimension_numbers<[1], [0], [0], [1], [0, 0, 1, 1], [], []>} : vector<16x128xbf16>, vector<128x256xbf16>, vector<16x256xf32> -> vector<16x256xf32>
    %c0_28 = arith.constant 0 : index
    %c768_29 = arith.constant 768 : index
    %37 = vector.load %arg5[%c0_28, %c768_29] : memref<1x1024xf32, #tpu.memory_space<vmem>>, vector<1x256xf32>
    %38 = vector.broadcast %37 : vector<1x256xf32> to vector<16x256xf32>
    %39 = arith.addf %36, %38 : vector<16x256xf32>
    %cst_30 = arith.constant 0.000000e+00 : f32
    %40 = vector.broadcast %cst_30 : f32 to vector<16x256xf32>
    %41 = arith.maximumf %39, %40 : vector<16x256xf32>
    %42 = arith.truncf %41 : vector<16x256xf32> to vector<16x256xbf16>
    %c768_31 = arith.constant 768 : index
    %c0_32 = arith.constant 0 : index
    %43 = vector.load %arg3[%c768_31, %c0_32] : memref<1024x128xbf16, #tpu.memory_space<vmem>>, vector<256x128xbf16>
    %cst_33 = arith.constant dense<0.000000e+00> : vector<16x128xf32>
    %44 = tpu.matmul %42, %43, %cst_33 {dimension_numbers = #tpu.dot_dimension_numbers<[1], [0], [0], [1], [0, 0, 1, 1], [], []>} : vector<16x256xbf16>, vector<256x128xbf16>, vector<16x128xf32> -> vector<16x128xf32>
    %45 = arith.addf %34, %44 : vector<16x128xf32>
    %c0_34 = arith.constant 0 : index
    %c0_35 = arith.constant 0 : index
    %46 = vector.load %arg6[%c0_34, %c0_35] : memref<8x128xf32, #tpu.memory_space<vmem>>, vector<1x128xf32>
    %47 = vector.broadcast %46 : vector<1x128xf32> to vector<16x128xf32>
    %48 = arith.addf %45, %47 : vector<16x128xf32>
    %cst_36 = arith.constant 0.000000e+00 : f32
    %49 = vector.broadcast %cst_36 : f32 to vector<16x128xf32>
    %50 = arith.maximumf %48, %49 : vector<16x128xf32>
    %51 = arith.truncf %50 : vector<16x128xf32> to vector<16x128xbf16>
    %c0_37 = arith.constant 0 : index
    %c0_38 = arith.constant 0 : index
    %c0_39 = arith.constant 0 : index
    %52 = vector.load %arg4[%c0_37, %c0_38, %c0_39] : memref<5x128x128xbf16, #tpu.memory_space<vmem>>, vector<1x128x128xbf16>
    %53 = vector.shape_cast %52 : vector<1x128x128xbf16> to vector<128x128xbf16>
    %cst_40 = arith.constant dense<0.000000e+00> : vector<16x128xf32>
    %54 = tpu.matmul %51, %53, %cst_40 {dimension_numbers = #tpu.dot_dimension_numbers<[1], [0], [0], [1], [0, 0, 1, 1], [], []>} : vector<16x128xbf16>, vector<128x128xbf16>, vector<16x128xf32> -> vector<16x128xf32>
    %c1 = arith.constant 1 : index
    %c0_41 = arith.constant 0 : index
    %55 = vector.load %arg6[%c1, %c0_41] : memref<8x128xf32, #tpu.memory_space<vmem>>, vector<1x128xf32>
    %56 = vector.broadcast %55 : vector<1x128xf32> to vector<16x128xf32>
    %57 = arith.addf %54, %56 : vector<16x128xf32>
    %58 = arith.truncf %57 : vector<16x128xf32> to vector<16x128xbf16>
    %c1_42 = arith.constant 1 : index
    %c0_43 = arith.constant 0 : index
    %c0_44 = arith.constant 0 : index
    %59 = vector.load %arg4[%c1_42, %c0_43, %c0_44] : memref<5x128x128xbf16, #tpu.memory_space<vmem>>, vector<1x128x128xbf16>
    %60 = vector.shape_cast %59 : vector<1x128x128xbf16> to vector<128x128xbf16>
    %cst_45 = arith.constant dense<0.000000e+00> : vector<16x128xf32>
    %61 = tpu.matmul %58, %60, %cst_45 {dimension_numbers = #tpu.dot_dimension_numbers<[1], [0], [0], [1], [0, 0, 1, 1], [], []>} : vector<16x128xbf16>, vector<128x128xbf16>, vector<16x128xf32> -> vector<16x128xf32>
    %c2 = arith.constant 2 : index
    %c0_46 = arith.constant 0 : index
    %62 = vector.load %arg6[%c2, %c0_46] : memref<8x128xf32, #tpu.memory_space<vmem>>, vector<1x128xf32>
    %63 = vector.broadcast %62 : vector<1x128xf32> to vector<16x128xf32>
    %64 = arith.addf %61, %63 : vector<16x128xf32>
    %cst_47 = arith.constant 0.000000e+00 : f32
    %65 = vector.broadcast %cst_47 : f32 to vector<16x128xf32>
    %66 = arith.maximumf %64, %65 : vector<16x128xf32>
    %67 = arith.truncf %66 : vector<16x128xf32> to vector<16x128xbf16>
    %c2_48 = arith.constant 2 : index
    %c0_49 = arith.constant 0 : index
    %c0_50 = arith.constant 0 : index
    %68 = vector.load %arg4[%c2_48, %c0_49, %c0_50] : memref<5x128x128xbf16, #tpu.memory_space<vmem>>, vector<1x128x128xbf16>
    %69 = vector.shape_cast %68 : vector<1x128x128xbf16> to vector<128x128xbf16>
    %cst_51 = arith.constant dense<0.000000e+00> : vector<16x128xf32>
    %70 = tpu.matmul %67, %69, %cst_51 {dimension_numbers = #tpu.dot_dimension_numbers<[1], [0], [0], [1], [0, 0, 1, 1], [], []>} : vector<16x128xbf16>, vector<128x128xbf16>, vector<16x128xf32> -> vector<16x128xf32>
    %c3 = arith.constant 3 : index
    %c0_52 = arith.constant 0 : index
    %71 = vector.load %arg6[%c3, %c0_52] : memref<8x128xf32, #tpu.memory_space<vmem>>, vector<1x128xf32>
    %72 = vector.broadcast %71 : vector<1x128xf32> to vector<16x128xf32>
    %73 = arith.addf %70, %72 : vector<16x128xf32>
    %74 = arith.addf %57, %73 : vector<16x128xf32>
    %cst_53 = arith.constant 0.000000e+00 : f32
    %75 = vector.broadcast %cst_53 : f32 to vector<16x128xf32>
    %76 = arith.maximumf %74, %75 : vector<16x128xf32>
    %77 = arith.truncf %76 : vector<16x128xf32> to vector<16x128xbf16>
    %c3_54 = arith.constant 3 : index
    %c0_55 = arith.constant 0 : index
    %c0_56 = arith.constant 0 : index
    %78 = vector.load %arg4[%c3_54, %c0_55, %c0_56] : memref<5x128x128xbf16, #tpu.memory_space<vmem>>, vector<1x128x128xbf16>
    %79 = vector.shape_cast %78 : vector<1x128x128xbf16> to vector<128x128xbf16>
    %cst_57 = arith.constant dense<0.000000e+00> : vector<16x128xf32>
    %80 = tpu.matmul %77, %79, %cst_57 {dimension_numbers = #tpu.dot_dimension_numbers<[1], [0], [0], [1], [0, 0, 1, 1], [], []>} : vector<16x128xbf16>, vector<128x128xbf16>, vector<16x128xf32> -> vector<16x128xf32>
    %c4 = arith.constant 4 : index
    %c0_58 = arith.constant 0 : index
    %81 = vector.load %arg6[%c4, %c0_58] : memref<8x128xf32, #tpu.memory_space<vmem>>, vector<1x128xf32>
    %82 = vector.broadcast %81 : vector<1x128xf32> to vector<16x128xf32>
    %83 = arith.addf %80, %82 : vector<16x128xf32>
    %cst_59 = arith.constant 0.000000e+00 : f32
    %84 = vector.broadcast %cst_59 : f32 to vector<16x128xf32>
    %85 = arith.maximumf %83, %84 : vector<16x128xf32>
    %86 = arith.truncf %85 : vector<16x128xf32> to vector<16x128xbf16>
    %c4_60 = arith.constant 4 : index
    %c0_61 = arith.constant 0 : index
    %c0_62 = arith.constant 0 : index
    %87 = vector.load %arg4[%c4_60, %c0_61, %c0_62] : memref<5x128x128xbf16, #tpu.memory_space<vmem>>, vector<1x128x128xbf16>
    %88 = vector.shape_cast %87 : vector<1x128x128xbf16> to vector<128x128xbf16>
    %cst_63 = arith.constant dense<0.000000e+00> : vector<16x128xf32>
    %89 = tpu.matmul %86, %88, %cst_63 {dimension_numbers = #tpu.dot_dimension_numbers<[1], [0], [0], [1], [0, 0, 1, 1], [], []>} : vector<16x128xbf16>, vector<128x128xbf16>, vector<16x128xf32> -> vector<16x128xf32>
    %c5 = arith.constant 5 : index
    %c0_64 = arith.constant 0 : index
    %90 = vector.load %arg6[%c5, %c0_64] : memref<8x128xf32, #tpu.memory_space<vmem>>, vector<1x128xf32>
    %91 = vector.broadcast %90 : vector<1x128xf32> to vector<16x128xf32>
    %92 = arith.addf %89, %91 : vector<16x128xf32>
    %93 = arith.addf %76, %92 : vector<16x128xf32>
    %cst_65 = arith.constant 0.000000e+00 : f32
    %94 = vector.broadcast %cst_65 : f32 to vector<16x128xf32>
    %95 = arith.maximumf %93, %94 : vector<16x128xf32>
    %c6 = arith.constant 6 : index
    %c0_66 = arith.constant 0 : index
    %96 = vector.load %arg6[%c6, %c0_66] : memref<8x128xf32, #tpu.memory_space<vmem>>, vector<1x128xf32>
    %97 = vector.broadcast %96 : vector<1x128xf32> to vector<16x128xf32>
    %98 = arith.mulf %95, %97 : vector<16x128xf32>
    %c7 = arith.constant 7 : index
    %c0_67 = arith.constant 0 : index
    %99 = vector.load %arg6[%c7, %c0_67] : memref<8x128xf32, #tpu.memory_space<vmem>>, vector<1x128xf32>
    %100 = vector.broadcast %99 : vector<1x128xf32> to vector<16x128xf32>
    %101 = arith.addf %98, %100 : vector<16x128xf32>
    %cst_68 = arith.constant dense<0.000000e+00> : vector<16xf32>
    %102 = vector.multi_reduction <add>, %101, %cst_68 [1] : vector<16x128xf32> to vector<16xf32>
    %103 = vector.shape_cast %102 : vector<16xf32> to vector<16x1xf32>
    %104 = tpu.transpose %103, [1, 0] : vector<16x1xf32> -> vector<1x16xf32>
    %105 = vector.shape_cast %104 : vector<1x16xf32> to vector<1x1x16xf32>
    %c0_69 = arith.constant 0 : index
    %c0_70 = arith.constant 0 : index
    %c0_71 = arith.constant 0 : index
    %106 = vector.load %arg7[%c0_69, %c0_70, %c0_71] : memref<1x1x16xf32, #tpu.memory_space<vmem>>, vector<1x1x16xf32>
    tpu.vector_store %arg7[%c0_69, %c0_70, %c0_71], %105 {strides = array<i32>} : memref<1x1x16xf32, #tpu.memory_space<vmem>>, vector<1x1x16xf32>,
    return
  }
  func.func @transform_0(%arg0: i32) -> (i32, i32) {
    %c0_i32 = arith.constant 0 : i32
    %c0_i32_0 = arith.constant 0 : i32
    return %arg0, %c0_i32 : i32, i32
  }
  func.func @transform_1(%arg0: i32) -> (i32, i32) {
    %c0_i32 = arith.constant 0 : i32
    %c0_i32_0 = arith.constant 0 : i32
    %c0_i32_1 = arith.constant 0 : i32
    return %c0_i32, %c0_i32_0 : i32, i32
  }
  func.func @transform_2(%arg0: i32) -> (i32, i32) {
    %c0_i32 = arith.constant 0 : i32
    %c0_i32_0 = arith.constant 0 : i32
    %c0_i32_1 = arith.constant 0 : i32
    return %c0_i32, %c0_i32_0 : i32, i32
  }
  func.func @transform_3(%arg0: i32) -> (i32, i32, i32) {
    %c0_i32 = arith.constant 0 : i32
    %c0_i32_0 = arith.constant 0 : i32
    %c0_i32_1 = arith.constant 0 : i32
    %c0_i32_2 = arith.constant 0 : i32
    return %c0_i32, %c0_i32_0, %c0_i32_1 : i32, i32, i32
  }
  func.func @transform_4(%arg0: i32) -> (i32, i32) {
    %c0_i32 = arith.constant 0 : i32
    %c0_i32_0 = arith.constant 0 : i32
    %c0_i32_1 = arith.constant 0 : i32
    return %c0_i32, %c0_i32_0 : i32, i32
  }
  func.func @transform_5(%arg0: i32) -> (i32, i32) {
    %c0_i32 = arith.constant 0 : i32
    %c0_i32_0 = arith.constant 0 : i32
    %c0_i32_1 = arith.constant 0 : i32
    return %c0_i32, %c0_i32_0 : i32, i32
  }
  func.func @transform_6(%arg0: i32) -> (i32, i32, i32) {
    %c0_i32 = arith.constant 0 : i32
    %c0_i32_0 = arith.constant 0 : i32
    %c0_i32_1 = arith.constant 0 : i32
    return %arg0, %c0_i32, %c0_i32_0 : i32, i32, i32
  }
}

</mosaic_0001>

<bundles_post_ra>
// kernel: tpu_custom_call.1
= control target key start
LH: loop header
LB: loop body
LE: loop exit
PB: predicated region body
PF: predicated region fallthrough
CT: control target
= control target key end

     0   :  { %11 = vsyncpa [#allocation3], 0  ;;  %s2888_s0 = inlined_call_operand.hbm [shape: bf16[16,128], index: 0, kind: input, shape index: {}]   ;;  %s2889_s1 = inlined_call_operand.hbm [shape: bf16[128,1024], index: 1, kind: input, shape index: {}]   ;;  %s2890_s2 = inlined_call_operand.hbm [shape: bf16[1024,128], index: 2, kind: input, shape index: {}]   ;;  %s2891_s3 = inlined_call_operand.hbm [shape: bf16[5,128,128], index: 3, kind: input, shape index: {}]   ;;  %s2892_s4 = inlined_call_operand.hbm [shape: f32[1,1024], index: 4, kind: input, shape index: {}]   ;;  %s2893_s5 = inlined_call_operand.vmem [shape: f32[8,128], index: 5, kind: input, shape index: {}]   ;;  %s2894_s6 = inlined_call_operand.hbm [shape: f32[1,1,16], index: 6, kind: output, shape index: {}]  }
   0x1   :  { %12 = vsyncpa [#allocation6], 0 }
   0x2   :  { %13 = vsyncpa [#allocation9], 0 }
   0x3   :  { %14 = vsyncpa [#allocation4], 0  ;;  %s2712_s21 = smov [#allocation5]  }
   0x4   :  { %s32_s22 = sshll.u32 %s2712_s21, 4  ;;  %s33_s22 = int_to_ptr.vmem [resolvable:$true] %s32_s22 }
   0x5   :  { %s2592_s23 = scalar_lea.vmem %s33_s22, 8192  ;;  %p2597_p1 = scmp.lt.s32.totalorder %s33_s22, %s33_s22 }
   0x6   :  { %p2593_p0 = scmp.ne.s32.totalorder %s33_s22, %s2592_s23  ;;  %p2598_p2 = scmp.lt.s32.totalorder %s2592_s23, %s2592_s23 }
   0x8   :  { %p2599_p3 = por %p2598_p2, %p2597_p1 }
   0xa   :  { %p2600_p4 = pnand %p2599_p3, %p2593_p0 }
   0xc   :  { %2603 = shalt.err (!%p2600_p4)
}
   0xd   :  { %s2713_s24 = smov 512   ;;  %s2714_s25 = smov 32  }
   0xe   :  { %38 = dma.hbm_to_vmem [thread:$0]  %s2889_s1, 8192, %s33_s22, [#allocation6], %s2713_s24, %s2713_s24, %s2714_s25  }
   0xf   :  { %s2715_s28 = smov [#allocation8]   ;;  %s2716_s30 = smov [#allocation2]  }
  0x10   :  { %s56_s29 = sshll.u32 %s2715_s28, 4  ;;  %s20_s7 = sshll.u32 %s2716_s30, 4  ;;  %s57_s29 = int_to_ptr.vmem [resolvable:$true] %s56_s29  ;;  %s21_s7 = int_to_ptr.vmem [resolvable:$true] %s20_s7 }
  0x11   :  { %s2612_s8 = scalar_lea.vmem %s57_s29, 5120  ;;  %p2617_p6 = scmp.lt.s32.totalorder %s57_s29, %s57_s29 }
  0x12   :  { %p2613_p5 = scmp.ne.s32.totalorder %s57_s29, %s2612_s8  ;;  %p2618_p7 = scmp.lt.s32.totalorder %s2612_s8, %s2612_s8 }
  0x14   :  { %p2619_p8 = por %p2618_p7, %p2617_p6 }
  0x16   :  { %p2620_p9 = pnand %p2619_p8, %p2613_p5 }
  0x18   :  { %2623 = shalt.err (!%p2620_p9)
}
  0x19   :  { %s2717_s9 = smov 64   ;;  %s2718_s10 = smov 4  }
  0x1a   :  { %62 = dma.hbm_to_vmem [thread:$0]  %s2891_s3, 5120, %s57_s29, [#allocation9], %s2717_s9, %s2717_s9, %s2718_s10  }
  0x1b   :  { %s2632_s1 = scalar_lea.vmem %s21_s7, 128  ;;  %p2637_p11 = scmp.lt.s32.totalorder %s21_s7, %s21_s7 }
  0x1c   :  { %p2633_p10 = scmp.ne.s32.totalorder %s21_s7, %s2632_s1  ;;  %p2638_p12 = scmp.lt.s32.totalorder %s2632_s1, %s2632_s1 }
  0x1e   :  { %p2639_p13 = por %p2638_p12, %p2637_p11 }
  0x20   :  { %p2640_p0 = pnand %p2639_p13, %p2633_p10 }
  0x22   :  { %2643 = shalt.err (!%p2640_p0)
}
  0x23   :  { %26 = dma.hbm_to_vmem [thread:$0]  %s2888_s0, 128, %s21_s7, [#allocation3], %s2717_s9, %s2717_s9, %s2718_s10  }
  0x24   :  { %s2719_s15 = smov [#allocation7]   ;;  %s2720_s17 = smov [#allocation10]  }
  0x25   :  { %s44_s16 = sshll.u32 %s2719_s15, 4  ;;  %s69_s18 = sshll.u32 %s2720_s17, 4  ;;  %s45_s16 = int_to_ptr.vmem [resolvable:$true] %s44_s16  ;;  %s70_s18 = int_to_ptr.vmem [resolvable:$true] %s69_s18 }
  0x26   :  { %s2652_s19 = scalar_lea.vmem %s45_s16, 8192  ;;  %p2657_p2 = scmp.lt.s32.totalorder %s45_s16, %s45_s16 }
  0x27   :  { %p2653_p1 = scmp.ne.s32.totalorder %s45_s16, %s2652_s19  ;;  %p2658_p3 = scmp.lt.s32.totalorder %s2652_s19, %s2652_s19 }
  0x29   :  { %p2659_p4 = por %p2658_p3, %p2657_p2 }
  0x2b   :  { %p2660_p5 = pnand %p2659_p4, %p2653_p1 }
  0x2d   :  { %2663 = shalt.err (!%p2660_p5)
}
  0x2e   :  { %50 = dma.hbm_to_vmem [thread:$0]  %s2890_s2, 8192, %s45_s16, [#allocation6], %s2717_s9, %s2717_s9, %s2718_s10  }
  0x2f   :  { %s2672_s21 = scalar_lea.vmem %s70_s18, 128  ;;  %p2677_p7 = scmp.lt.s32.totalorder %s70_s18, %s70_s18 }
  0x30   :  { %p2673_p6 = scmp.ne.s32.totalorder %s70_s18, %s2672_s21  ;;  %p2678_p8 = scmp.lt.s32.totalorder %s2672_s21, %s2672_s21 }
  0x32   :  { %p2679_p9 = por %p2678_p8, %p2677_p7 }
  0x34   :  { %p2680_p10 = pnand %p2679_p9, %p2673_p6 }
  0x36   :  { %2683 = shalt.err (!%p2680_p10)
}
  0x37   :  { %72 = dma.hbm_to_vmem [thread:$0]  %s2892_s4, 128, %s70_s18, [#allocation9]  }
  0x38   :  { %2704 = dma.done.wait [#allocation3], 128  }
  0x39   :  { %2705 = vsyncadd [#allocation3], 4294967168 }
  0x3a   :  { %2706 = dma.done.wait [#allocation6], 16384  }
  0x3b   :  { %2707 = vsyncadd [#allocation6], 4294950912 }
  0x3c   :  { %2708 = dma.done.wait [#allocation9], 5248  }
  0x3d   :  { %2709 = vsyncadd [#allocation9], 4294962048  ;;  %v2721_v0 = vmov 0   ;;  %v107_v1 = vld [vmem:[#allocation5 + $0x1c0] sm:$0xff]  ;;  %v302_v3 = vld [vmem:[#allocation5 + $0x1c8] sm:$0xff]  ;;  %vm2723_vm0 = vmmov 0  }
  0x3e   :  { %239 = vmatprep.mubr.bf16.mxu0 %v2721_v0  ;;  %428 = vmatprep.mubr.bf16.mxu1 %v2721_v0  ;;  %v108_v2 = vld [vmem:[#allocation5 + $0x1e0] sm:$0xff]  ;;  %v303_v5 = vld [vmem:[#allocation5 + $0x1e8] sm:$0xff]  ;;  %s2724_s1 = smov [#allocation11]   ;;  %vm2037_vm1 = vcmask 122880  }
  0x3f   :  { %v2072_v4 = vcombine.high %v107_v1, %v108_v2  ;;  %v2071_v6 = vcombine.low %v107_v1, %v108_v2  ;;  %v105_v7 = vld [vmem:[#allocation5 + $0x180] sm:$0xff]  ;;  %v2088_v9 = vcombine.high %v302_v3, %v303_v5  ;;  %v2087_v10 = vcombine.low %v302_v3, %v303_v5  ;;  %v300_v12 = vld [vmem:[#allocation5 + $0x188] sm:$0xff]  ;;  %v2777_v2 = vld [vmem:[#allocation2] sm:$0xff]   ;;  %s2045_s13 = sshll.u32 %s2724_s1, 4  ;;  %s2046_s13 = int_to_ptr.vmem [resolvable:$true] %s2045_s13 }
  0x40   :  { %v106_v8 = vld [vmem:[#allocation5 + $0x1a0] sm:$0xff]  ;;  %v301_v13 = vld [vmem:[#allocation5 + $0x1a8] sm:$0xff]  ;;  %v2480_v3 = vld [vmem:[#allocation7 + $0xf8] sm:$0xff]   ;;  %s2684_s14 = scalar_lea.vmem %s2046_s13, 16  ;;  %p2689_p12 = scmp.lt.s32.totalorder %s2046_s13, %s2046_s13 }
  0x41   :  { %v2070_v11 = vcombine.high %v105_v7, %v106_v8  ;;  %v103_v14 = vld [vmem:[#allocation5 + $0x140] sm:$0xff]  ;;  %207 = vmatprep.subr.bf16.mxu0 %v2072_v4  ;;  %v2086_v15 = vcombine.high %v300_v12, %v301_v13  ;;  %v298_v17 = vld [vmem:[#allocation5 + $0x148] sm:$0xff]  ;;  %396 = vmatprep.subr.bf16.mxu1 %v2088_v9  ;;  %v2069_v19 = vcombine.low %v105_v7, %v106_v8  ;;  %v2481_v4 = vld [vmem:[#allocation7 + $0xb8] sm:$0xff]   ;;  %p2685_p11 = scmp.ne.s32.totalorder %s2046_s13, %s2684_s14 }
  0x42   :  { %v104_v16 = vld [vmem:[#allocation5 + $0x160] sm:$0xff]  ;;  %v299_v18 = vld [vmem:[#allocation5 + $0x168] sm:$0xff]  ;;  %208 = vmatpush1.bf16.msra.mxu0 %v2071_v6  ;;  %397 = vmatpush1.bf16.msra.mxu1 %v2087_v10  ;;  %v2085_v20 = vcombine.low %v300_v12, %v301_v13  ;;  %v2482_v5 = vld [vmem:[#allocation7 + $0x78] sm:$0xff]  }
  0x43   :  { %209 = vmatprep.subr.bf16.mxu0 %v2070_v11  ;;  %v2068_v21 = vcombine.high %v103_v14, %v104_v16  ;;  %398 = vmatprep.subr.bf16.mxu1 %v2086_v15  ;;  %v2084_v22 = vcombine.high %v298_v17, %v299_v18  ;;  %v101_v23 = vld [vmem:[#allocation5 + $0x100] sm:$0xff]  ;;  %v296_v25 = vld [vmem:[#allocation5 + $0x108] sm:$0xff]  ;;  %v2067_v27 = vcombine.low %v103_v14, %v104_v16  ;;  %v2483_v6 = vld [vmem:[#allocation7 + $0x38] sm:$0xff]  }
  0x44   :  { %v102_v24 = vld [vmem:[#allocation5 + $0x120] sm:$0xff]  ;;  %v297_v26 = vld [vmem:[#allocation5 + $0x128] sm:$0xff]  ;;  %v2083_v28 = vcombine.low %v298_v17, %v299_v18  ;;  %v2484_v7 = vld [vmem:[#allocation7 + $0xf0] sm:$0xff]  }
  0x45   :  { %v2066_v29 = vcombine.high %v101_v23, %v102_v24  ;;  %v99_v30 = vld [vmem:[#allocation5 + $0xc0] sm:$0xff]  ;;  %v2082_v31 = vcombine.high %v296_v25, %v297_v26  ;;  %v294_v33 = vld [vmem:[#allocation5 + $0xc8] sm:$0xff]  ;;  %v2065_v35 = vcombine.low %v101_v23, %v102_v24  ;;  %v2081_v37 = vcombine.low %v296_v25, %v297_v26  ;;  %v2486_v8 = vld [vmem:[#allocation7 + $0x70] sm:$0xff]  }
  0x46   :  { %210 = vmatpush1.bf16.msra.mxu0 %v2069_v19  ;;  %399 = vmatpush1.bf16.msra.mxu1 %v2085_v20  ;;  %v100_v32 = vld [vmem:[#allocation5 + $0xe0] sm:$0xff]  ;;  %v295_v34 = vld [vmem:[#allocation5 + $0xe8] sm:$0xff]  ;;  %v2485_v9 = vld [vmem:[#allocation7 + $0xb0] sm:$0xff]  }
  0x47   :  { %211 = vmatprep.subr.bf16.mxu0 %v2068_v21  ;;  %400 = vmatprep.subr.bf16.mxu1 %v2084_v22  ;;  %v97_v36 = vld [vmem:[#allocation5 + $0x80] sm:$0xff]  ;;  %v2064_v38 = vcombine.high %v99_v30, %v100_v32  ;;  %v2080_v40 = vcombine.high %v294_v33, %v295_v34  ;;  %v292_v41 = vld [vmem:[#allocation5 + $0x88] sm:$0xff]  ;;  %v2063_v43 = vcombine.low %v99_v30, %v100_v32  ;;  %v2487_v10 = vld [vmem:[#allocation7 + $0x30] sm:$0xff]  }
  0x48   :  { %v98_v39 = vld [vmem:[#allocation5 + $0xa0] sm:$0xff]  ;;  %v293_v42 = vld [vmem:[#allocation5 + $0xa8] sm:$0xff]  ;;  %v2079_v45 = vcombine.low %v294_v33, %v295_v34  ;;  %v2496_v19 = vld [vmem:[#allocation7 + $0xd8] sm:$0xff]  }
  0x49   :  { %v95_v44 = vld [vmem:[#allocation5 + $0x40] sm:$0xff]  ;;  %v2062_v46 = vcombine.high %v97_v36, %v98_v39  ;;  %v2078_v48 = vcombine.high %v292_v41, %v293_v42  ;;  %v290_v49 = vld [vmem:[#allocation5 + $0x48] sm:$0xff]  ;;  %v2061_v51 = vcombine.low %v97_v36, %v98_v39  ;;  %v2077_v53 = vcombine.low %v292_v41, %v293_v42  ;;  %v2498_v20 = vld [vmem:[#allocation7 + $0x58] sm:$0xff]  }
  0x4a   :  { %212 = vmatpush1.bf16.msra.mxu0 %v2067_v27  ;;  %401 = vmatpush1.bf16.msra.mxu1 %v2083_v28  ;;  %v96_v47 = vld [vmem:[#allocation5 + $0x60] sm:$0xff]  ;;  %v291_v50 = vld [vmem:[#allocation5 + $0x68] sm:$0xff]  ;;  %v2497_v21 = vld [vmem:[#allocation7 + $0x98] sm:$0xff]   ;;  %v111_v39 = vlaneseq }
  0x4b   :  { %213 = vmatprep.subr.bf16.mxu0 %v2066_v29  ;;  %402 = vmatprep.subr.bf16.mxu1 %v2082_v31  ;;  %v93_v52 = vld [vmem:[#allocation5] sm:$0xff]  ;;  %v2060_v54 = vcombine.high %v95_v44, %v96_v47  ;;  %v2076_v56 = vcombine.high %v290_v49, %v291_v50  ;;  %v288_v57 = vld [vmem:[#allocation5 + $0x8] sm:$0xff]  ;;  %v2059_v59 = vcombine.low %v95_v44, %v96_v47  ;;  %v2499_v22 = vld [vmem:[#allocation7 + $0x18] sm:$0xff]  }
  0x4c   :  { %v94_v55 = vld [vmem:[#allocation5 + $0x20] sm:$0xff]  ;;  %v289_v58 = vld [vmem:[#allocation5 + $0x28] sm:$0xff]  ;;  %v2075_v60 = vcombine.low %v290_v49, %v291_v50  ;;  %v2500_v23 = vld [vmem:[#allocation7 + $0xd0] sm:$0xff]  }
  0x4d   :  { %v2058_v61 = vcombine.high %v93_v52, %v94_v55  ;;  %v2074_v62 = vcombine.high %v288_v57, %v289_v58  ;;  %v2057_v63 = vcombine.low %v93_v52, %v94_v55  ;;  %v2073_v1 = vcombine.low %v288_v57, %v289_v58  ;;  %v2488_v11 = vld [vmem:[#allocation7 + $0xe8] sm:$0xff]   ;;  %v2492_v15 = vld [vmem:[#allocation7 + $0xe0] sm:$0xff]   ;;  %v2501_v24 = vld [vmem:[#allocation7 + $0x90] sm:$0xff]  }
  0x4e   :  { %214 = vmatpush1.bf16.msra.mxu0 %v2065_v35  ;;  %403 = vmatpush1.bf16.msra.mxu1 %v2081_v37  ;;  %v2490_v12 = vld [vmem:[#allocation7 + $0x68] sm:$0xff]   ;;  %v2494_v16 = vld [vmem:[#allocation7 + $0x60] sm:$0xff]   ;;  %v2502_v25 = vld [vmem:[#allocation7 + $0x50] sm:$0xff]  }
  0x4f   :  { %215 = vmatprep.subr.bf16.mxu0 %v2064_v38  ;;  %404 = vmatprep.subr.bf16.mxu1 %v2080_v40  ;;  %v2489_v13 = vld [vmem:[#allocation7 + $0xa8] sm:$0xff]   ;;  %v2493_v17 = vld [vmem:[#allocation7 + $0xa0] sm:$0xff]   ;;  %v2503_v26 = vld [vmem:[#allocation7 + $0x10] sm:$0xff]   ;;  %v112_v40 = vshrl.u32 %v111_v39, 7 }
  0x50   :  { %v2491_v14 = vld [vmem:[#allocation7 + $0x28] sm:$0xff]   ;;  %v2495_v18 = vld [vmem:[#allocation7 + $0x20] sm:$0xff]   ;;  %v765_v35 = vld [vmem:[#allocation5 + $0x1d0] sm:$0xff] }
  0x51   :  { %v2504_v27 = vld [vmem:[#allocation7 + $0xc8] sm:$0xff]   ;;  %v2508_v31 = vld [vmem:[#allocation7 + $0xc0] sm:$0xff]   ;;  %v766_v36 = vld [vmem:[#allocation5 + $0x1f0] sm:$0xff]  ;;  %v2781_v42 = vsub.s32 0, %v112_v40 }
  0x52   :  { %216 = vmatpush1.bf16.msra.mxu0 %v2063_v43  ;;  %405 = vmatpush1.bf16.msra.mxu1 %v2079_v45  ;;  %v2505_v28 = vld [vmem:[#allocation7 + $0x88] sm:$0xff]   ;;  %v2509_v32 = vld [vmem:[#allocation7 + $0x80] sm:$0xff]   ;;  %v2136_v37 = vcombine.high %v765_v35, %v766_v36  ;;  %v2135_v38 = vcombine.low %v765_v35, %v766_v36  ;;  %v2783_v43 = vsub.s32 1, %v112_v40  ;;  %v754_v35 = vld [vmem:[#allocation5 + $0x70] sm:$0xff] }
  0x53   :  { %217 = vmatprep.subr.bf16.mxu0 %v2062_v46  ;;  %406 = vmatprep.subr.bf16.mxu1 %v2078_v48  ;;  %v2506_v29 = vld [vmem:[#allocation7 + $0x48] sm:$0xff]   ;;  %v2510_v33 = vld [vmem:[#allocation7 + $0x40] sm:$0xff]   ;;  %v752_v39 = vld [vmem:[#allocation5 + $0x30] sm:$0xff] }
  0x54   :  { %v2507_v30 = vld [vmem:[#allocation7 + $0x8] sm:$0xff]   ;;  %v2511_v34 = vld [vmem:[#allocation7] sm:$0xff]  }
  0x55   :  { %v109_v41 = vld [vmem:[#allocation10] sm:$0x3]  ;;  %v304_v47 = vld [vmem:[#allocation10 + $0x2] sm:$0x3] }
  0x56   :  { %218 = vmatpush1.bf16.msra.mxu0 %v2061_v51  ;;  %407 = vmatpush1.bf16.msra.mxu1 %v2077_v53  ;;  %v114_v44 = vrot.slane %v109_v41, %v2781_v42  ;;  %v118_v45 = vrot.slane %v109_v41, %v2783_v43  ;;  %v313_v51 = vrot.slane %v304_v47, %v2783_v43 }
  0x57   :  { %219 = vmatprep.subr.bf16.mxu0 %v2060_v54  ;;  %408 = vmatprep.subr.bf16.mxu1 %v2076_v56  ;;  %v309_v52 = vrot.slane %v304_v47, %v2781_v42 }
  0x5a   :  { %220 = vmatpush1.bf16.msra.mxu0 %v2059_v59  ;;  %409 = vmatpush1.bf16.msra.mxu1 %v2075_v60 }
  0x5b   :  { %221 = vmatprep.subr.bf16.mxu0 %v2058_v61  ;;  %410 = vmatprep.subr.bf16.mxu1 %v2074_v62 }
  0x5e   :  { %222 = vmatpush1.bf16.msra.mxu0 %v2057_v63  ;;  %411 = vmatpush1.bf16.msra.mxu1 %v2073_v1 }
  0x5f   :  { %2233 = vmatprep.subr.bf16.mxu0 %v2480_v3  ;;  %2255 = vmatprep.subr.bf16.mxu1 %v2482_v5 }
  0x61   :  { %240 = vmatmul.mubr.bf16.vlgmr.msra.gmra.mxu0 %v2777_v2  ;;  %429 = vmatmul.mubr.bf16.vlgmr.msra.gmra.mxu1 %v2777_v2 }
  0x62   :  { %2234 = vmatpush3.bf16.msra.mxu0 %v2481_v4  ;;  %2256 = vmatpush3.bf16.msra.mxu1 %v2483_v6 }
  0x63   :  { %2235 = vmatprep.subr.bf16.mxu0 %v2484_v7  ;;  %2257 = vmatprep.subr.bf16.mxu1 %v2486_v8 }
  0x66   :  { %2236 = vmatpush3.bf16.msra.mxu0 %v2485_v9  ;;  %2258 = vmatpush3.bf16.msra.mxu1 %v2487_v10 }
  0x67   :  { %2237 = vmatprep.subr.bf16.mxu0 %v2488_v11  ;;  %2259 = vmatprep.subr.bf16.mxu1 %v2490_v12  ;;  %v763_v11 = vld [vmem:[#allocation5 + $0x190] sm:$0xff] }
  0x68   :  { %v764_v12 = vld [vmem:[#allocation5 + $0x1b0] sm:$0xff] }
  0x6a   :  { %2238 = vmatpush3.bf16.msra.mxu0 %v2489_v13  ;;  %2260 = vmatpush3.bf16.msra.mxu1 %v2491_v14 }
  0x6b   :  { %2239 = vmatprep.subr.bf16.mxu0 %v2492_v15  ;;  %2261 = vmatprep.subr.bf16.mxu1 %v2494_v16 }
  0x6e   :  { %2240 = vmatpush3.bf16.msra.mxu0 %v2493_v17  ;;  %2262 = vmatpush3.bf16.msra.mxu1 %v2495_v18  ;;  %v2134_v17 = vcombine.high %v763_v11, %v764_v12  ;;  %v761_v18 = vld [vmem:[#allocation5 + $0x150] sm:$0xff] }
  0x6f   :  { %2241 = vmatprep.subr.bf16.mxu0 %v2496_v19  ;;  %2263 = vmatprep.subr.bf16.mxu1 %v2498_v20  ;;  %v762_v19 = vld [vmem:[#allocation5 + $0x170] sm:$0xff]  ;;  %v2133_v20 = vcombine.low %v763_v11, %v764_v12 }
  0x72   :  { %2242 = vmatpush3.bf16.msra.mxu0 %v2497_v21  ;;  %2264 = vmatpush3.bf16.msra.mxu1 %v2499_v22  ;;  %v2132_v21 = vcombine.high %v761_v18, %v762_v19  ;;  %v759_v22 = vld [vmem:[#allocation5 + $0x110] sm:$0xff] }
  0x73   :  { %2243 = vmatprep.subr.bf16.mxu0 %v2500_v23  ;;  %2265 = vmatprep.subr.bf16.mxu1 %v2502_v25  ;;  %v760_v23 = vld [vmem:[#allocation5 + $0x130] sm:$0xff] }
  0x74   :  { %v2130_v25 = vcombine.high %v759_v22, %v760_v23 }
  0x76   :  { %2244 = vmatpush3.bf16.msra.mxu0 %v2501_v24  ;;  %2266 = vmatpush3.bf16.msra.mxu1 %v2503_v26  ;;  %v2131_v24 = vcombine.low %v761_v18, %v762_v19  ;;  %v757_v26 = vld [vmem:[#allocation5 + $0xd0] sm:$0xff]  ;;  %v2516_v18 = vld [vmem:[#allocation7 + $0x168] sm:$0xff]  }
  0x77   :  { %2245 = vmatprep.subr.bf16.mxu0 %v2504_v27  ;;  %2267 = vmatprep.subr.bf16.mxu1 %v2506_v29  ;;  %v758_v27 = vld [vmem:[#allocation5 + $0xf0] sm:$0xff]  ;;  %v2517_v19 = vld [vmem:[#allocation7 + $0x128] sm:$0xff]  }
  0x78   :  { %v2128_v29 = vcombine.high %v757_v26, %v758_v27 }
  0x7a   :  { %2246 = vmatpush3.bf16.msra.mxu0 %v2505_v28  ;;  %2268 = vmatpush3.bf16.msra.mxu1 %v2507_v30  ;;  %v2129_v28 = vcombine.low %v759_v22, %v760_v23  ;;  %v755_v30 = vld [vmem:[#allocation5 + $0x90] sm:$0xff]  ;;  %v2520_v22 = vld [vmem:[#allocation7 + $0x158] sm:$0xff]  }
  0x7b   :  { %2247 = vmatprep.subr.bf16.mxu0 %v2508_v31  ;;  %2269 = vmatprep.subr.bf16.mxu1 %v2510_v33  ;;  %v756_v31 = vld [vmem:[#allocation5 + $0xb0] sm:$0xff]  ;;  %v2521_v23 = vld [vmem:[#allocation7 + $0x118] sm:$0xff]  }
  0x7c   :  { %v2126_v33 = vcombine.high %v755_v30, %v756_v31  ;;  %v2125_v36 = vcombine.low %v755_v30, %v756_v31 }
  0x7e   :  { %2248 = vmatpush3.bf16.msra.mxu0 %v2509_v32  ;;  %2270 = vmatpush3.bf16.msra.mxu1 %v2511_v34  ;;  %v2127_v32 = vcombine.low %v757_v26, %v758_v27  ;;  %v753_v34 = vld [vmem:[#allocation5 + $0x50] sm:$0xff]  ;;  %v2525_v26 = vld [vmem:[#allocation7 + $0x108] sm:$0xff]   ;;  %v2526_v27 = vld [vmem:[#allocation7 + $0x140] sm:$0xff]  }
  0x7f   :  { %859 = vmatprep.subr.bf16.mxu0 %v2136_v37  ;;  %v2124_v37 = vcombine.high %v753_v34, %v754_v35  ;;  %v2123_v40 = vcombine.low %v753_v34, %v754_v35 }
 0x121   :  { %v241_v46 = vpop.f32.mrf.mxu0  ;;  %v430_v48 = vpop.f32.mrf.mxu1 }
 0x122   :  { %v242_v49 = vadd.f32 %v241_v46, %v114_v44  ;;  %v431_v62 = vadd.f32 %v430_v48, %v309_v52  ;;  %v1091_v48 = vld [vmem:[#allocation5 + $0x198] sm:$0xff] }
 0x123   :  { %v243_v50 = vpop.f32.mrf.mxu0  ;;  %v432_v54 = vpop.f32.mrf.mxu1 }
 0x124   :  { %v244_v53 = vadd.f32 %v243_v50, %v118_v45  ;;  %v250_v58 = vmax.f32 %v242_v49, 0.0  ;;  %v433_v59 = vadd.f32 %v432_v54, %v313_v51  ;;  %v439_v13 = vmax.f32 %v431_v62, 0.0  ;;  %v1092_v49 = vld [vmem:[#allocation5 + $0x1b8] sm:$0xff] }
 0x125   :  { %v245_v55 = vpop.f32.mrf.mxu0  ;;  %v434_v57 = vpop.f32.mrf.mxu1  ;;  %v2165_v54 = vcombine.low %v1091_v48, %v1092_v49 }
 0x126   :  { %v246_v56 = vadd.f32 %v245_v55, %v114_v44  ;;  %v435_v60 = vadd.f32 %v434_v57, %v309_v52  ;;  %v251_v63 = vmax.f32 %v244_v53, 0.0  ;;  %v440_v8 = vmax.f32 %v433_v59, 0.0  ;;  %v1093_v44 = vld [vmem:[#allocation5 + $0x1d8] sm:$0xff] }
 0x127   :  { %v247_v61 = vpop.f32.mrf.mxu0  ;;  %v436_v4 = vpop.f32.mrf.mxu1  ;;  %v1089_v52 = vld [vmem:[#allocation5 + $0x158] sm:$0xff] }
 0x128   :  { %v252_v1 = vmax.f32 %v246_v56, 0.0  ;;  %v248_v3 = vadd.f32 %v247_v61, %v118_v45  ;;  %v437_v5 = vadd.f32 %v436_v4, %v313_v51  ;;  %v441_v6 = vmax.f32 %v435_v60, 0.0  ;;  %v1094_v45 = vld [vmem:[#allocation5 + $0x1f8] sm:$0xff] }
 0x129   :  { %v2168_v47 = vcombine.high %v1093_v44, %v1094_v45  ;;  %v2167_v50 = vcombine.low %v1093_v44, %v1094_v45  ;;  %v2166_v51 = vcombine.high %v1091_v48, %v1092_v49  ;;  %v1090_v53 = vld [vmem:[#allocation5 + $0x178] sm:$0xff] }
 0x12a   :  { %v253_v7 = vmax.f32 %v248_v3, 0.0  ;;  %v254_v9 = vpack.c.bf16 %v252_v1, %v250_v58  ;;  %v442_v10 = vmax.f32 %v437_v5, 0.0  ;;  %v443_v16 = vpack.c.bf16 %v441_v6, %v439_v13  ;;  %v1087_v56 = vld [vmem:[#allocation5 + $0x118] sm:$0xff] }
 0x12b   :  { %v2164_v55 = vcombine.high %v1089_v52, %v1090_v53  ;;  %v1088_v57 = vld [vmem:[#allocation5 + $0x138] sm:$0xff]  ;;  %v2163_v58 = vcombine.low %v1089_v52, %v1090_v53 }
 0x12c   :  { %v255_v14 = vpack.c.bf16 %v253_v7, %v251_v63  ;;  %v444_v15 = vpack.c.bf16 %v442_v10, %v440_v8  ;;  %v2162_v59 = vcombine.high %v1087_v56, %v1088_v57  ;;  %v1085_v60 = vld [vmem:[#allocation5 + $0xd8] sm:$0xff]  ;;  %v2161_v62 = vcombine.low %v1087_v56, %v1088_v57  ;;  %v2530_v56 = vld [vmem:[#allocation7 + $0x1f0] sm:$0xff]  }
 0x12d   :  { %v1086_v61 = vld [vmem:[#allocation5 + $0xf8] sm:$0xff]  ;;  %v2531_v57 = vld [vmem:[#allocation7 + $0x1b0] sm:$0xff]  }
 0x12e   :  { %742 = vmatprep.mubr.bf16.mxu1 %v255_v14  ;;  %605 = vmatprep.mubr.bf16.mxu0 %v444_v15  ;;  %v2160_v63 = vcombine.high %v1085_v60, %v1086_v61  ;;  %v1083_v1 = vld [vmem:[#allocation5 + $0x98] sm:$0xff]  ;;  %v2159_v4 = vcombine.low %v1085_v60, %v1086_v61  ;;  %v2534_v60 = vld [vmem:[#allocation7 + $0x1e0] sm:$0xff]  }
 0x12f   :  { %743 = vmatmul.mubr.bf16.vlgmr.msra.gmra.mxu1 %v254_v9  ;;  %606 = vmatmul.mubr.bf16.vlgmr.msra.gmra.mxu0 %v443_v16  ;;  %v1084_v3 = vld [vmem:[#allocation5 + $0xb8] sm:$0xff]  ;;  %v2514_v16 = vld [vmem:[#allocation7 + $0x170] sm:$0xff]   ;;  %v2535_v61 = vld [vmem:[#allocation7 + $0x1a0] sm:$0xff]  }
 0x130   :  { %860 = vmatpush1.bf16.msra.mxu0 %v2135_v38  ;;  %891 = vmatprep.mubr.bf16.mxu0 %v2721_v0  ;;  %v751_v38 = vld [vmem:[#allocation5 + $0x10] sm:$0xff]  ;;  %v1081_v5 = vld [vmem:[#allocation5 + $0x58] sm:$0xff]  ;;  %v2157_v7 = vcombine.low %v1083_v1, %v1084_v3 }
 0x131   :  { %861 = vmatprep.subr.bf16.mxu0 %v2134_v17  ;;  %v2122_v41 = vcombine.high %v751_v38, %v752_v39  ;;  %v2121_v46 = vcombine.low %v751_v38, %v752_v39  ;;  %v1082_v6 = vld [vmem:[#allocation5 + $0x78] sm:$0xff]  ;;  %v2515_v17 = vld [vmem:[#allocation7 + $0x130] sm:$0xff]  }
 0x132   :  { %v2156_v8 = vcombine.high %v1081_v5, %v1082_v6  ;;  %v1079_v9 = vld [vmem:[#allocation5 + $0x18] sm:$0xff]  ;;  %v2155_v11 = vcombine.low %v1081_v5, %v1082_v6  ;;  %v2540_v5 = vld [vmem:[#allocation7 + $0x1c8] sm:$0xff]  }
 0x133   :  { %v1080_v10 = vld [vmem:[#allocation5 + $0x38] sm:$0xff] }
 0x134   :  { %862 = vmatpush1.bf16.msra.mxu0 %v2133_v20  ;;  %v2154_v12 = vcombine.high %v1079_v9, %v1080_v10  ;;  %v2153_v13 = vcombine.low %v1079_v9, %v1080_v10  ;;  %v2512_v14 = vld [vmem:[#allocation7 + $0x178] sm:$0xff]   ;;  %v2518_v20 = vld [vmem:[#allocation7 + $0x160] sm:$0xff]   ;;  %v2541_v9 = vld [vmem:[#allocation7 + $0x188] sm:$0xff]  }
 0x135   :  { %863 = vmatprep.subr.bf16.mxu0 %v2132_v21  ;;  %v2513_v15 = vld [vmem:[#allocation7 + $0x138] sm:$0xff]   ;;  %2277 = vmatprep.subr.bf16.mxu1 %v2512_v14  ;;  %v2519_v21 = vld [vmem:[#allocation7 + $0x120] sm:$0xff]  }
 0x136   :  { %2278 = vmatpush3.bf16.msra.mxu1 %v2513_v15 }
 0x137   :  { %2279 = vmatprep.subr.bf16.mxu1 %v2514_v16 }
 0x138   :  { %864 = vmatpush1.bf16.msra.mxu0 %v2131_v24  ;;  %v2523_v24 = vld [vmem:[#allocation7 + $0x110] sm:$0xff]  }
 0x139   :  { %865 = vmatprep.subr.bf16.mxu0 %v2130_v25  ;;  %v2524_v25 = vld [vmem:[#allocation7 + $0x148] sm:$0xff]  }
 0x13a   :  { %2280 = vmatpush3.bf16.msra.mxu1 %v2515_v17  ;;  %v2543_v17 = vld [vmem:[#allocation7 + $0x180] sm:$0xff]  }
 0x13b   :  { %2281 = vmatprep.subr.bf16.mxu1 %v2516_v18 }
 0x13c   :  { %866 = vmatpush1.bf16.msra.mxu0 %v2129_v28  ;;  %v2527_v28 = vld [vmem:[#allocation7 + $0x100] sm:$0xff]  }
 0x13d   :  { %867 = vmatprep.subr.bf16.mxu0 %v2128_v29  ;;  %v2528_v29 = vld [vmem:[#allocation7 + $0x1f8] sm:$0xff]  }
 0x13e   :  { %2282 = vmatpush3.bf16.msra.mxu1 %v2517_v19 }
 0x13f   :  { %2283 = vmatprep.subr.bf16.mxu1 %v2518_v20 }
 0x140   :  { %868 = vmatpush1.bf16.msra.mxu0 %v2127_v32 }
 0x141   :  { %869 = vmatprep.subr.bf16.mxu0 %v2126_v33 }
 0x142   :  { %2284 = vmatpush3.bf16.msra.mxu1 %v2519_v21 }
 0x143   :  { %2285 = vmatprep.subr.bf16.mxu1 %v2520_v22  ;;  %v2544_v22 = vld [vmem:[#allocation8 + $0x38] sm:$0xff]  }
 0x144   :  { %870 = vmatpush1.bf16.msra.mxu0 %v2125_v36  ;;  %v767_v36 = vld [vmem:[#allocation10 + $0x4] sm:$0x3] }
 0x145   :  { %871 = vmatprep.subr.bf16.mxu0 %v2124_v37  ;;  %v776_v38 = vrot.slane %v767_v36, %v2783_v43  ;;  %v772_v39 = vrot.slane %v767_v36, %v2781_v42  ;;  %v2556_v36 = vld [vmem:[#allocation8 + $0x58] sm:$0xff]  }
 0x146   :  { %2286 = vmatpush3.bf16.msra.mxu1 %v2521_v23  ;;  %v2722_v23 = vmov 0.0  }
 0x148   :  { %872 = vmatpush1.bf16.msra.mxu0 %v2123_v40 }
 0x149   :  { %873 = vmatprep.subr.bf16.mxu0 %v2122_v41 }
 0x14c   :  { %874 = vmatpush1.bf16.msra.mxu0 %v2121_v46 }
 0x14d   :  { %1187 = vmatprep.subr.bf16.mxu0 %v2168_v47 }
 0x14f   :  { %892 = vmatmul.mubr.bf16.vlgmr.msra.gmra.mxu0 %v2777_v2 }
 0x150   :  { %1188 = vmatpush1.bf16.msra.mxu0 %v2167_v50  ;;  %1219 = vmatprep.mubr.bf16.mxu0 %v2721_v0  ;;  %v2158_v0 = vcombine.high %v1083_v1, %v1084_v3  ;;  %v2538_v1 = vld [vmem:[#allocation7 + $0x1d0] sm:$0xff]   ;;  %v1095_v3 = vld [vmem:[#allocation10 + $0x6] sm:$0x3] }
 0x151   :  { %1189 = vmatprep.subr.bf16.mxu0 %v2166_v51  ;;  %v1104_v6 = vrot.slane %v1095_v3, %v2783_v43 }
 0x154   :  { %1190 = vmatpush1.bf16.msra.mxu0 %v2165_v54  ;;  %v2529_v54 = vld [vmem:[#allocation7 + $0x1b8] sm:$0xff]  }
 0x155   :  { %1191 = vmatprep.subr.bf16.mxu0 %v2164_v55 }
 0x158   :  { %1192 = vmatpush1.bf16.msra.mxu0 %v2163_v58  ;;  %v2532_v58 = vld [vmem:[#allocation7 + $0x1e8] sm:$0xff]  }
 0x159   :  { %1193 = vmatprep.subr.bf16.mxu0 %v2162_v59  ;;  %v2533_v59 = vld [vmem:[#allocation7 + $0x1a8] sm:$0xff]  }
 0x15c   :  { %1194 = vmatpush1.bf16.msra.mxu0 %v2161_v62  ;;  %v2536_v62 = vld [vmem:[#allocation7 + $0x1d8] sm:$0xff]  }
 0x15d   :  { %1195 = vmatprep.subr.bf16.mxu0 %v2160_v63  ;;  %v2537_v63 = vld [vmem:[#allocation7 + $0x198] sm:$0xff]  }
 0x160   :  { %1196 = vmatpush1.bf16.msra.mxu0 %v2159_v4  ;;  %v2539_v4 = vld [vmem:[#allocation7 + $0x190] sm:$0xff]  }
 0x161   :  { %1197 = vmatprep.subr.bf16.mxu0 %v2158_v0 }
 0x164   :  { %1198 = vmatpush1.bf16.msra.mxu0 %v2157_v7  ;;  %v1100_v7 = vrot.slane %v1095_v3, %v2781_v42 }
 0x165   :  { %1199 = vmatprep.subr.bf16.mxu0 %v2156_v8 }
 0x168   :  { %1200 = vmatpush1.bf16.msra.mxu0 %v2155_v11  ;;  %v2542_v11 = vld [vmem:[#allocation7 + $0x1c0] sm:$0xff]  }
 0x169   :  { %1201 = vmatprep.subr.bf16.mxu0 %v2154_v12 }
 0x16c   :  { %1202 = vmatpush1.bf16.msra.mxu0 %v2153_v13 }
 0x16d   :  { %2366 = vmatprep.subr.bf16.mxu0 %v2722_v23 }
 0x16f   :  { %1220 = vmatmul.mubr.bf16.vlgmr.msra.gmra.mxu0 %v2777_v2  ;;  %v2522_v2 = vld [vmem:[#allocation7 + $0x150] sm:$0xff]  }
 0x170   :  { %2287 = vmatprep.subr.bf16.mxu1 %v2522_v2  ;;  %2367 = vmatpush3.bf16.msra.mxu0 %v2544_v22  ;;  %v2545_v2 = vld [vmem:[#allocation8 + $0x30] sm:$0xff]  }
 0x171   :  { %2288 = vmatpush3.bf16.msra.mxu1 %v2523_v24  ;;  %2368 = vmatprep.subr.bf16.mxu0 %v2722_v23  ;;  %v2546_v24 = vld [vmem:[#allocation8 + $0x28] sm:$0xff]   ;;  %v2569_v22 = vld [vmem:[#allocation8 + $0xf0] sm:$0xff]  }
 0x172   :  { %2289 = vmatprep.subr.bf16.mxu1 %v2524_v25  ;;  %v2547_v25 = vld [vmem:[#allocation8 + $0x20] sm:$0xff]   ;;  %2382 = vmatprep.mubr.msk.bf16.mxu0 %vm2723_vm0, %v2722_v23 }
 0x174   :  { %2369 = vmatpush3.bf16.msra.mxu0 %v2545_v2  ;;  %v2570_v2 = vld [vmem:[#allocation8 + $0xe8] sm:$0xff]  }
 0x175   :  { %2290 = vmatpush3.bf16.msra.mxu1 %v2525_v26  ;;  %2370 = vmatprep.subr.bf16.mxu0 %v2722_v23  ;;  %v2548_v26 = vld [vmem:[#allocation8 + $0x18] sm:$0xff]  }
 0x176   :  { %2291 = vmatprep.subr.bf16.mxu1 %v2526_v27  ;;  %v2549_v27 = vld [vmem:[#allocation8 + $0x10] sm:$0xff]  }
 0x178   :  { %2371 = vmatpush3.bf16.msra.mxu0 %v2546_v24  ;;  %v2571_v24 = vld [vmem:[#allocation8 + $0xe0] sm:$0xff]  }
 0x179   :  { %2292 = vmatpush3.bf16.msra.mxu1 %v2527_v28  ;;  %2372 = vmatprep.subr.bf16.mxu0 %v2722_v23  ;;  %v2550_v28 = vld [vmem:[#allocation8 + $0x8] sm:$0xff]  }
 0x17a   :  { %2299 = vmatprep.subr.bf16.mxu1 %v2528_v29  ;;  %v2551_v29 = vld [vmem:[#allocation8] sm:$0xff]  }
 0x17c   :  { %2373 = vmatpush3.bf16.msra.mxu0 %v2547_v25  ;;  %v2572_v25 = vld [vmem:[#allocation8 + $0xd8] sm:$0xff]  }
 0x17d   :  { %2374 = vmatprep.subr.bf16.mxu0 %v2722_v23 }
 0x180   :  { %2375 = vmatpush3.bf16.msra.mxu0 %v2548_v26  ;;  %v2195_v26 = vld [vmem:[%s2893_s5 + $0x2] ss:$0 sm:$0xff] }
 0x181   :  { %2376 = vmatprep.subr.bf16.mxu0 %v2722_v23 }
 0x184   :  { %2377 = vmatpush3.bf16.msra.mxu0 %v2549_v27 }
 0x185   :  { %2378 = vmatprep.subr.bf16.mxu0 %v2722_v23 }
 0x188   :  { %2379 = vmatpush3.bf16.msra.mxu0 %v2550_v28 }
 0x189   :  { %2380 = vmatprep.subr.bf16.mxu0 %v2722_v23 }
 0x18c   :  { %2381 = vmatpush3.bf16.msra.mxu0 %v2551_v29 }
 0x18d   :  { %2406 = vmatprep.subr.bf16.mxu0 %v2722_v23 }
 0x1ef   :  { %v2249_v30 = vpop.f32.mrf.mxu0 }
 0x1f1   :  { %v2250_v31 = vpop.f32.mrf.mxu0 }
 0x1f2   :  { %v2793_v32 = vadd.f32 %v2250_v31, %v2249_v30  ;;  %v2552_v30 = vld [vmem:[#allocation8 + $0x78] sm:$0xff]   ;;  %v2553_v31 = vld [vmem:[#allocation8 + $0x70] sm:$0xff]  }
 0x1f3   :  { %v2252_v33 = vpop.f32.mrf.mxu0 }
 0x1f5   :  { %v2253_v34 = vpop.f32.mrf.mxu0 }
 0x1f6   :  { %v2795_v35 = vadd.f32 %v2253_v34, %v2252_v33  ;;  %v2554_v33 = vld [vmem:[#allocation8 + $0x68] sm:$0xff]   ;;  %v2555_v34 = vld [vmem:[#allocation8 + $0x60] sm:$0xff]  }
 0x20f   :  { %v893_v37 = vpop.f32.mrf.mxu0 }
 0x210   :  { %v894_v46 = vadd.f32 %v893_v37, %v772_v39  ;;  %v2557_v37 = vld [vmem:[#allocation8 + $0x50] sm:$0xff]  }
 0x211   :  { %v895_v40 = vpop.f32.mrf.mxu0 }
 0x212   :  { %v896_v44 = vadd.f32 %v895_v40, %v776_v38  ;;  %v902_v52 = vmax.f32 %v894_v46, 0.0 }
 0x213   :  { %v897_v41 = vpop.f32.mrf.mxu0 }
 0x214   :  { %v898_v45 = vadd.f32 %v897_v41, %v772_v39  ;;  %v903_v50 = vmax.f32 %v896_v44, 0.0 }
 0x215   :  { %v899_v47 = vpop.f32.mrf.mxu0 }
 0x216   :  { %v900_v48 = vadd.f32 %v899_v47, %v776_v38  ;;  %v904_v49 = vmax.f32 %v898_v45, 0.0  ;;  %v2271_v38 = vpop.f32.mrf.mxu1 }
 0x218   :  { %v905_v51 = vmax.f32 %v900_v48, 0.0  ;;  %v906_v55 = vpack.c.bf16 %v904_v49, %v902_v52  ;;  %v2272_v39 = vpop.f32.mrf.mxu1 }
 0x219   :  { %v2273_v47 = vadd.f32 %v2272_v39, %v2271_v38  ;;  %v2573_v38 = vld [vmem:[#allocation8 + $0xd0] sm:$0xff]   ;;  %v2574_v39 = vld [vmem:[#allocation8 + $0xc8] sm:$0xff]  }
 0x21a   :  { %v907_v53 = vpack.c.bf16 %v905_v51, %v903_v50  ;;  %v2274_v40 = vpop.f32.mrf.mxu1 }
 0x21b   :  { %v745_v51 = vadd.f32 %v2273_v47, %v2793_v32  ;;  %v2580_v47 = vld [vmem:[#allocation8 + $0x118] sm:$0xff]  }
 0x21c   :  { %1068 = vmatprep.mubr.bf16.mxu1 %v907_v53  ;;  %v2275_v41 = vpop.f32.mrf.mxu1 }
 0x21d   :  { %1069 = vmatmul.mubr.bf16.vlgmr.msra.gmra.mxu1 %v906_v55  ;;  %v2276_v52 = vadd.f32 %v2275_v41, %v2274_v40  ;;  %v2575_v40 = vld [vmem:[#allocation8 + $0xc0] sm:$0xff]   ;;  %v2576_v41 = vld [vmem:[#allocation8 + $0x138] sm:$0xff]  }
 0x21e   :  { %2300 = vmatpush3.bf16.msra.mxu1 %v2529_v54 }
 0x21f   :  { %2301 = vmatprep.subr.bf16.mxu1 %v2530_v56 }
 0x222   :  { %2302 = vmatpush3.bf16.msra.mxu1 %v2531_v57 }
 0x223   :  { %2303 = vmatprep.subr.bf16.mxu1 %v2532_v58  ;;  %v748_v58 = vadd.f32 %v2276_v52, %v2795_v35  ;;  %v2559_v35 = vld [vmem:[#allocation8 + $0x40] sm:$0xff]  }
 0x226   :  { %2304 = vmatpush3.bf16.msra.mxu1 %v2533_v59 }
 0x227   :  { %2305 = vmatprep.subr.bf16.mxu1 %v2534_v60  ;;  %v2185_v60 = vld [vmem:[%s2893_s5] ss:$0 sm:$0xff] }
 0x22a   :  { %2306 = vmatpush3.bf16.msra.mxu1 %v2535_v61 }
 0x22b   :  { %2307 = vmatprep.subr.bf16.mxu1 %v2536_v62 }
 0x22e   :  { %2308 = vmatpush3.bf16.msra.mxu1 %v2537_v63 }
 0x22f   :  { %v1221_v0 = vpop.f32.mrf.mxu0  ;;  %2309 = vmatprep.subr.bf16.mxu1 %v2538_v1 }
 0x230   :  { %v1222_v14 = vadd.f32 %v1221_v0, %v1100_v7 }
 0x231   :  { %v1223_v8 = vpop.f32.mrf.mxu0 }
 0x232   :  { %2310 = vmatpush3.bf16.msra.mxu1 %v2539_v4  ;;  %v1224_v12 = vadd.f32 %v1223_v8, %v1104_v6  ;;  %v1230_v43 = vmax.f32 %v1222_v14, 0.0  ;;  %v2561_v8 = vld [vmem:[#allocation8 + $0xb0] sm:$0xff]  }
 0x233   :  { %v1225_v10 = vpop.f32.mrf.mxu0  ;;  %2311 = vmatprep.subr.bf16.mxu1 %v2540_v5 }
 0x234   :  { %v1226_v13 = vadd.f32 %v1225_v10, %v1100_v7  ;;  %v1231_v19 = vmax.f32 %v1224_v12, 0.0  ;;  %v2560_v7 = vld [vmem:[#allocation8 + $0xb8] sm:$0xff]   ;;  %v2563_v10 = vld [vmem:[#allocation8 + $0xa0] sm:$0xff]  }
 0x235   :  { %v1227_v15 = vpop.f32.mrf.mxu0 }
 0x236   :  { %v1228_v16 = vadd.f32 %v1227_v15, %v1104_v6  ;;  %2312 = vmatpush3.bf16.msra.mxu1 %v2541_v9  ;;  %v1232_v18 = vmax.f32 %v1226_v13, 0.0  ;;  %v2558_v6 = vld [vmem:[#allocation8 + $0x48] sm:$0xff]   ;;  %v2186_v13 = vld [vmem:[%s2893_s5 + $0x1] ss:$0 sm:$0xff] }
 0x237   :  { %2313 = vmatprep.subr.bf16.mxu1 %v2542_v11  ;;  %v2562_v9 = vld [vmem:[#allocation8 + $0xa8] sm:$0xff]   ;;  %v2564_v11 = vld [vmem:[#allocation8 + $0x98] sm:$0xff]  }
 0x238   :  { %v1233_v20 = vmax.f32 %v1228_v16, 0.0  ;;  %v1234_v42 = vpack.c.bf16 %v1232_v18, %v1230_v43  ;;  %v2566_v43 = vld [vmem:[#allocation8 + $0x88] sm:$0xff]  }
 0x23a   :  { %v1235_v21 = vpack.c.bf16 %v1233_v20, %v1231_v19  ;;  %2314 = vmatpush3.bf16.msra.mxu1 %v2543_v17  ;;  %v2565_v20 = vld [vmem:[#allocation8 + $0x90] sm:$0xff]  }
 0x23b   :  { %2386 = vmatprep.subr.bf16.mxu1 %v2722_v23 }
 0x23c   :  { %1396 = vmatprep.mubr.bf16.mxu1 %v1235_v21  ;;  %v2567_v21 = vld [vmem:[#allocation8 + $0x80] sm:$0xff]  }
 0x23d   :  { %1397 = vmatmul.mubr.bf16.vlgmr.msra.gmra.mxu1 %v1234_v42  ;;  %v2568_v42 = vld [vmem:[#allocation8 + $0xf8] sm:$0xff]  }
 0x23e   :  { %2402 = vmatprep.mubr.msk.bf16.mxu1 %vm2723_vm0, %v2722_v23  ;;  %2387 = vmatpush3.bf16.msra.mxu1 %v2552_v30 }
 0x23f   :  { %2388 = vmatprep.subr.bf16.mxu1 %v2722_v23 }
 0x242   :  { %2389 = vmatpush3.bf16.msra.mxu1 %v2553_v31 }
 0x243   :  { %2390 = vmatprep.subr.bf16.mxu1 %v2722_v23 }
 0x246   :  { %2391 = vmatpush3.bf16.msra.mxu1 %v2554_v33 }
 0x247   :  { %2392 = vmatprep.subr.bf16.mxu1 %v2722_v23 }
 0x24a   :  { %2393 = vmatpush3.bf16.msra.mxu1 %v2555_v34 }
 0x24b   :  { %2394 = vmatprep.subr.bf16.mxu1 %v2722_v23 }
 0x24e   :  { %2395 = vmatpush3.bf16.msra.mxu1 %v2556_v36 }
 0x24f   :  { %2396 = vmatprep.subr.bf16.mxu1 %v2722_v23 }
 0x252   :  { %2397 = vmatpush3.bf16.msra.mxu1 %v2557_v37 }
 0x253   :  { %2398 = vmatprep.subr.bf16.mxu1 %v2722_v23 }
 0x256   :  { %2399 = vmatpush3.bf16.msra.mxu1 %v2558_v6 }
 0x257   :  { %2400 = vmatprep.subr.bf16.mxu1 %v2722_v23 }
 0x25a   :  { %2401 = vmatpush3.bf16.msra.mxu1 %v2559_v35 }
 0x25b   :  { %2426 = vmatprep.subr.bf16.mxu1 %v2722_v23 }
 0x2dd   :  { %v2293_v44 = vpop.f32.mrf.mxu1 }
 0x2df   :  { %v2294_v45 = vpop.f32.mrf.mxu1 }
 0x2e0   :  { %v2295_v49 = vadd.f32 %v2294_v45, %v2293_v44  ;;  %v2577_v44 = vld [vmem:[#allocation8 + $0x130] sm:$0xff]   ;;  %v2578_v45 = vld [vmem:[#allocation8 + $0x128] sm:$0xff]  }
 0x2e1   :  { %v2296_v46 = vpop.f32.mrf.mxu1 }
 0x2e2   :  { %v1077_v54 = vadd.f32 %v2295_v49, %v745_v51 }
 0x2e3   :  { %v2297_v48 = vpop.f32.mrf.mxu1 }
 0x2e4   :  { %v2298_v55 = vadd.f32 %v2297_v48, %v2296_v46  ;;  %v2579_v46 = vld [vmem:[#allocation8 + $0x120] sm:$0xff]   ;;  %v2204_v48 = vld [vmem:[%s2893_s5 + $0x3] ss:$0 sm:$0xff] }
 0x2e6   :  { %v1078_v62 = vadd.f32 %v2298_v55, %v748_v58 }
 0x2fd   :  { %v2315_v50 = vpop.f32.mrf.mxu1 }
 0x2ff   :  { %v2316_v53 = vpop.f32.mrf.mxu1 }
 0x300   :  { %v2317_v56 = vadd.f32 %v2316_v53, %v2315_v50 }
 0x301   :  { %v2318_v57 = vpop.f32.mrf.mxu1 }
 0x302   :  { %v1405_v59 = vadd.f32 %v2317_v56, %v1077_v54 }
 0x303   :  { %v2319_v61 = vpop.f32.mrf.mxu1 }
 0x304   :  { %v2320_v63 = vadd.f32 %v2319_v61, %v2318_v57  ;;  %v1412_v1 = vadd.f32 %v2185_v60, %v1405_v59  ;;  %v2582_v61 = vld [vmem:[#allocation8 + $0x108] sm:$0xff]  }
 0x306   :  { %v1406_v3 = vadd.f32 %v2320_v63, %v1078_v62  ;;  %v1414_v32 = vmax.f32 %v1412_v1, 0.0  ;;  %v2583_v62 = vld [vmem:[#allocation8 + $0x100] sm:$0xff]   ;;  %v2213_v63 = vld [vmem:[%s2893_s5 + $0x4] ss:$0 sm:$0xff] }
 0x308   :  { %v1413_v4 = vadd.f32 %v2185_v60, %v1406_v3  ;;  %v2581_v60 = vld [vmem:[#allocation8 + $0x110] sm:$0xff]  }
 0x30a   :  { %v1415_v0 = vmax.f32 %v1413_v4, 0.0 }
 0x30c   :  { %v1416_v5 = vpack.c.bf16 %v1415_v0, %v1414_v32 }
 0x30e   :  { %2383 = vmatmul.mubr.bf16.vlgmr.msra.gmra.mxu0 %v1416_v5 }
 0x30f   :  { %2422 = vmatprep.mubr.msk.bf16.mxu0 %vm2723_vm0, %v2722_v23  ;;  %2407 = vmatpush3.bf16.msra.mxu0 %v2560_v7 }
 0x310   :  { %2408 = vmatprep.subr.bf16.mxu0 %v2722_v23 }
 0x313   :  { %2409 = vmatpush3.bf16.msra.mxu0 %v2561_v8 }
 0x314   :  { %2410 = vmatprep.subr.bf16.mxu0 %v2722_v23 }
 0x317   :  { %2411 = vmatpush3.bf16.msra.mxu0 %v2562_v9 }
 0x318   :  { %2412 = vmatprep.subr.bf16.mxu0 %v2722_v23 }
 0x31b   :  { %2413 = vmatpush3.bf16.msra.mxu0 %v2563_v10 }
 0x31c   :  { %2414 = vmatprep.subr.bf16.mxu0 %v2722_v23 }
 0x31f   :  { %2415 = vmatpush3.bf16.msra.mxu0 %v2564_v11 }
 0x320   :  { %2416 = vmatprep.subr.bf16.mxu0 %v2722_v23 }
 0x323   :  { %2417 = vmatpush3.bf16.msra.mxu0 %v2565_v20 }
 0x324   :  { %2418 = vmatprep.subr.bf16.mxu0 %v2722_v23 }
 0x327   :  { %2419 = vmatpush3.bf16.msra.mxu0 %v2566_v43 }
 0x328   :  { %2420 = vmatprep.subr.bf16.mxu0 %v2722_v23 }
 0x32b   :  { %2421 = vmatpush3.bf16.msra.mxu0 %v2567_v21 }
 0x32c   :  { %2446 = vmatprep.subr.bf16.mxu0 %v2722_v23 }
 0x3ce   :  { %v1520_v12 = vpop.f32.mrf.mxu0 }
 0x3cf   :  { %v2838_v16 = vadd.f32 %v2186_v13, %v1520_v12 }
 0x3d0   :  { %v2384_v14 = vpop.f32.mrf.mxu0 }
 0x3d2   :  { %v1523_v15 = vpop.f32.mrf.mxu0 }
 0x3d3   :  { %v2840_v17 = vadd.f32 %v2186_v13, %v1523_v15  ;;  %v2231_v13 = vld [vmem:[%s2893_s5 + $0x6] ss:$0 sm:$0xff] }
 0x3d4   :  { %v2385_v18 = vpop.f32.mrf.mxu0 }
 0x3d5   :  { %v1527_v19 = vpack.c.bf16 %v2840_v17, %v2838_v16 }
 0x3d7   :  { %2403 = vmatmul.mubr.bf16.vlgmr.msra.gmra.mxu1 %v1527_v19 }
 0x3d8   :  { %2442 = vmatprep.mubr.msk.bf16.mxu1 %vm2723_vm0, %v2722_v23  ;;  %2427 = vmatpush3.bf16.msra.mxu1 %v2568_v42 }
 0x3d9   :  { %2428 = vmatprep.subr.bf16.mxu1 %v2722_v23 }
 0x3dc   :  { %2429 = vmatpush3.bf16.msra.mxu1 %v2569_v22 }
 0x3dd   :  { %2430 = vmatprep.subr.bf16.mxu1 %v2722_v23 }
 0x3e0   :  { %2431 = vmatpush3.bf16.msra.mxu1 %v2570_v2 }
 0x3e1   :  { %2432 = vmatprep.subr.bf16.mxu1 %v2722_v23 }
 0x3e4   :  { %2433 = vmatpush3.bf16.msra.mxu1 %v2571_v24 }
 0x3e5   :  { %2434 = vmatprep.subr.bf16.mxu1 %v2722_v23 }
 0x3e8   :  { %2435 = vmatpush3.bf16.msra.mxu1 %v2572_v25 }
 0x3e9   :  { %2436 = vmatprep.subr.bf16.mxu1 %v2722_v23 }
 0x3ec   :  { %2437 = vmatpush3.bf16.msra.mxu1 %v2573_v38 }
 0x3ed   :  { %2438 = vmatprep.subr.bf16.mxu1 %v2722_v23 }
 0x3f0   :  { %2439 = vmatpush3.bf16.msra.mxu1 %v2574_v39 }
 0x3f1   :  { %2440 = vmatprep.subr.bf16.mxu1 %v2722_v23 }
 0x3f4   :  { %2441 = vmatpush3.bf16.msra.mxu1 %v2575_v40 }
 0x497   :  { %v1632_v27 = vpop.f32.mrf.mxu1 }
 0x498   :  { %v1633_v29 = vadd.f32 %v2195_v26, %v1632_v27 }
 0x499   :  { %v2404_v28 = vpop.f32.mrf.mxu1 }
 0x49a   :  { %v1639_v34 = vmax.f32 %v1633_v29, 0.0 }
 0x49b   :  { %v1635_v30 = vpop.f32.mrf.mxu1 }
 0x49c   :  { %v1636_v31 = vadd.f32 %v2195_v26, %v1635_v30 }
 0x49d   :  { %v2405_v33 = vpop.f32.mrf.mxu1 }
 0x49e   :  { %v1640_v36 = vmax.f32 %v1636_v31, 0.0 }
 0x4a0   :  { %v1641_v37 = vpack.c.bf16 %v1640_v36, %v1639_v34 }
 0x4a2   :  { %2423 = vmatmul.mubr.bf16.vlgmr.msra.gmra.mxu0 %v1641_v37 }
 0x4a3   :  { %2462 = vmatprep.mubr.msk.bf16.mxu0 %vm2723_vm0, %v2722_v23  ;;  %2447 = vmatpush3.bf16.msra.mxu0 %v2576_v41 }
 0x4a4   :  { %2448 = vmatprep.subr.bf16.mxu0 %v2722_v23 }
 0x4a7   :  { %2449 = vmatpush3.bf16.msra.mxu0 %v2577_v44 }
 0x4a8   :  { %2450 = vmatprep.subr.bf16.mxu0 %v2722_v23 }
 0x4ab   :  { %2451 = vmatpush3.bf16.msra.mxu0 %v2578_v45 }
 0x4ac   :  { %2452 = vmatprep.subr.bf16.mxu0 %v2722_v23 }
 0x4af   :  { %2453 = vmatpush3.bf16.msra.mxu0 %v2579_v46 }
 0x4b0   :  { %2454 = vmatprep.subr.bf16.mxu0 %v2722_v23 }
 0x4b3   :  { %2455 = vmatpush3.bf16.msra.mxu0 %v2580_v47 }
 0x4b4   :  { %2456 = vmatprep.subr.bf16.mxu0 %v2722_v23 }
 0x4b7   :  { %2457 = vmatpush3.bf16.msra.mxu0 %v2581_v60 }
 0x4b8   :  { %2458 = vmatprep.subr.bf16.mxu0 %v2722_v23 }
 0x4bb   :  { %2459 = vmatpush3.bf16.msra.mxu0 %v2582_v61 }
 0x4bc   :  { %2460 = vmatprep.subr.bf16.mxu0 %v2722_v23  ;;  %v2222_v23 = vld [vmem:[%s2893_s5 + $0x5] ss:$0 sm:$0xff] }
 0x4bf   :  { %2461 = vmatpush3.bf16.msra.mxu0 %v2583_v62 }
 0x562   :  { %v1746_v49 = vpop.f32.mrf.mxu0 }
 0x563   :  { %v1747_v50 = vadd.f32 %v2204_v48, %v1746_v49 }
 0x564   :  { %v2424_v51 = vpop.f32.mrf.mxu0 }
 0x565   :  { %v1753_v53 = vadd.f32 %v1747_v50, %v2838_v16 }
 0x566   :  { %v1749_v52 = vpop.f32.mrf.mxu0 }
 0x567   :  { %v1750_v54 = vadd.f32 %v2204_v48, %v1749_v52  ;;  %v1755_v57 = vmax.f32 %v1753_v53, 0.0 }
 0x568   :  { %v2425_v55 = vpop.f32.mrf.mxu0 }
 0x569   :  { %v1754_v56 = vadd.f32 %v1750_v54, %v2840_v17  ;;  %v2232_v17 = vld [vmem:[%s2893_s5 + $0x7] ss:$0 sm:$0xff]  ;;  %s2688_s5 = scalar_lea.vmem %s2046_s13, 32 }
 0x56a   :  { %p2690_p13 = scmp.lt.s32.totalorder %s2688_s5, %s2684_s14 }
 0x56b   :  { %v1756_v58 = vmax.f32 %v1754_v56, 0.0 }
 0x56c   :  { %p2691_p0 = por %p2690_p13, %p2689_p12 }
 0x56d   :  { %v1757_v59 = vpack.c.bf16 %v1756_v58, %v1755_v57 }
 0x56e   :  { %p2692_p1 = pnand %p2691_p0, %p2685_p11 }
 0x56f   :  { %2443 = vmatmul.mubr.bf16.vlgmr.msra.gmra.mxu1 %v1757_v59 }
 0x62f   :  { %v1862_v1 = vpop.f32.mrf.mxu1 }
 0x630   :  { %v1863_v4 = vadd.f32 %v2213_v63, %v1862_v1 }
 0x631   :  { %v2444_v3 = vpop.f32.mrf.mxu1 }
 0x632   :  { %v1869_v6 = vmax.f32 %v1863_v4, 0.0 }
 0x633   :  { %v1865_v32 = vpop.f32.mrf.mxu1 }
 0x634   :  { %v1866_v0 = vadd.f32 %v2213_v63, %v1865_v32 }
 0x635   :  { %v2445_v5 = vpop.f32.mrf.mxu1 }
 0x636   :  { %v1870_v35 = vmax.f32 %v1866_v0, 0.0 }
 0x638   :  { %v1871_v7 = vpack.c.bf16 %v1870_v35, %v1869_v6 }
 0x63a   :  { %2463 = vmatmul.mubr.bf16.vlgmr.msra.gmra.mxu0 %v1871_v7 }
 0x6fa   :  { %v1976_v8 = vpop.f32.mrf.mxu0 }
 0x6fb   :  { %v1977_v9 = vadd.f32 %v2222_v23, %v1976_v8 }
 0x6fc   :  { %v2464_v10 = vpop.f32.mrf.mxu0 }
 0x6fd   :  { %v1983_v11 = vadd.f32 %v1977_v9, %v1755_v57 }
 0x6fe   :  { %v1979_v12 = vpop.f32.mrf.mxu0 }
 0x6ff   :  { %v1985_v14 = vmax.f32 %v1983_v11, 0.0  ;;  %v1980_v15 = vadd.f32 %v2222_v23, %v1979_v12 }
 0x700   :  { %v2465_v16 = vpop.f32.mrf.mxu0 }
 0x701   :  { %v1984_v18 = vadd.f32 %v1980_v15, %v1756_v58  ;;  %v1992_v19 = vmul.f32 %v2231_v13, %v1985_v14 }
 0x703   :  { %v1986_v20 = vmax.f32 %v1984_v18, 0.0  ;;  %v1999_v43 = vadd.f32 %v2232_v17, %v1992_v19 }
 0x705   :  { %2001 = vadd.xlane.f32.xlu0 %v1999_v43  ;;  %v1993_v21 = vmul.f32 %v2231_v13, %v1986_v20 }
 0x707   :  { %v2000_v42 = vadd.f32 %v2232_v17, %v1993_v21 }
 0x709   :  { %2003 = vadd.xlane.f32.xlu0 %v2000_v42 }
 0x78e   :  { %v2002_v22 = vpop.xlane.xlu0 %2001 }
 0x78f   :  { %2005 = vxpose.xlu1.b32.start [1/2] (short) (narrow) %v2002_v22, 8 }
 0x792   :  { %v2004_v2 = vpop.xlane.xlu0 %2003 }
 0x793   :  { %2006 = vxpose.xlu1.b32.end [2/2] (short) (narrow) %v2004_v2, 8 }
 0x80b   :  { %v2021_v24 = vpop.trf.xlu1 }
 0x80c   :  { %2038 = vst.msk [vmem:[#allocation11] sm:$0x1] %vm2037_vm1, %v2021_v24 }
 0x80d   :  { %2695 = shalt.err (!%p2692_p1)
}
 0x80e   :  { %2048 = dma.vmem_to_hbm [thread:$0]  %s2046_s13, 16, %s2894_s6, [#allocation4]  }
 0x80f   :  { %2710 = dma.done.wait [#allocation4], 16  }
 0x810   :  { %2711 = vsyncadd [#allocation4], 4294967280 }
 0x811   :  { %2052 = vsyncpa [#allocation3], 1 }
 0x812   :  { %2053 = vsyncpa [#allocation6], 1 }
 0x813   :  { %2054 = vsyncpa [#allocation9], 1 }
 0x814   :  { %2055 = vsyncpa [#allocation4], 1 }

</bundles_post_ra>
